<compile_context>
chip_gen: v5e
topology: v5e:2x2
jax: 0.10.0
libtpu: 0.0.40
codegen_flags: <defaults>
</compile_context>

<pallas_src>
import jax
import jax.numpy as jnp
from jax.experimental import pallas as pl
from jax.experimental.pallas import tpu as pltpu


def uinet_kernel(uid_ref, vid_ref,            # scalar-prefetch ids (SMEM)
                 eu_hbm, ei_hbm,              # embedding tables (HBM, ANY)
                 a_ref, b_ref,                # packed conv weights (E, E*C)
                 cb_ref, lw_ref,              # conv bias / linear weights (1, E*C)
                 lb_ref,                      # linear bias (SMEM scalar)
                 out_ref,                     # (1, 1, BM) lane-dense output
                 u_buf, v_buf, sem):          # VMEM scratch + DMA semaphores
    bm, _ = u_buf.shape
    base = pl.program_id(0) * bm

    # ---- fused embedding gather: per-row DMAs, all in flight at once -------
    copies = []
    for r in range(bm):
        uidx = uid_ref[base + r]
        vidx = vid_ref[base + r]
        cu = pltpu.make_async_copy(eu_hbm.at[pl.ds(uidx, 1), :],
                                   u_buf.at[pl.ds(r, 1), :], sem.at[0, r])
        cv = pltpu.make_async_copy(ei_hbm.at[pl.ds(vidx, 1), :],
                                   v_buf.at[pl.ds(r, 1), :], sem.at[1, r])
        cu.start()
        cv.start()
        copies.append((cu, cv))
    for cu, cv in copies:
        cu.wait()
        cv.wait()

    u = u_buf[...]                                   # (BM, E)
    v = v_buf[...]                                   # (BM, E)

    # ---- conv (incl. width shift) as two MXU matmuls ------------------------
    # conv_flat[b, w*C + c] = w00[c]*u[b,w] + w01[c]*u[b,w+1]
    #                       + w10[c]*v[b,w] + w11[c]*v[b,w+1] + cb[c]
    hi = jax.lax.Precision.HIGHEST
    conv = (jnp.dot(u, a_ref[...], precision=hi,
                    preferred_element_type=jnp.float32)
            + jnp.dot(v, b_ref[...], precision=hi,
                      preferred_element_type=jnp.float32)
            + cb_ref[...])                           # (BM, E*C)
    act = jnp.maximum(conv, 0.0)                     # ReLU

    # flatten(1) + Linear: lw_flat[w*C + c] = lin_w[c*(E-1)+w]; the w = E-1
    # column (which never wraps around, so it is finite) is multiplied by an
    # exactly-zero weight and drops out.
    y = jnp.sum(act * lw_ref[...], axis=-1)          # (BM,)
    out_ref[...] = y.reshape(1, 1, bm) + lb_ref[0, 0]


def uinet_pallas_forward(x, params, *, block_b=8):
    B = x.shape[0]
    E = params["embedding_user"].shape[1]
    C = params["conv_w"].shape[0]
    n_class = params["lin_w"].shape[0]
    assert n_class == 1
    # TODO(synk): generalize the final reduction to n_class > 1 (batched linear).

    num_tiles = pl.cdiv(B, block_b)
    b_pad = num_tiles * block_b

    uid = x[:, 0].astype(jnp.int32)
    vid = x[:, 1].astype(jnp.int32)
    # NOTE: x[:, 2] is dead in the reference forward -> no gather issued.
    if b_pad != B:
        uid = jnp.pad(uid, (0, b_pad - B))
        vid = jnp.pad(vid, (0, b_pad - B))

    # ---- weight re-packing (pure layout; done once in the wrapper) ---------
    W = params["conv_w"].astype(jnp.float32)         # (C, 1, 2, 2)
    w00, w01 = W[:, 0, 0, 0], W[:, 0, 0, 1]
    w10, w11 = W[:, 0, 1, 0], W[:, 0, 1, 1]
    eye = jnp.eye(E, dtype=jnp.float32)              # eye[j, w]  : j == w
    nxt = jnp.eye(E, k=-1, dtype=jnp.float32)        # nxt[j, w]  : j == w + 1
    a_mat = (eye[:, :, None] * w00[None, None, :]
             + nxt[:, :, None] * w01[None, None, :]).reshape(E, E * C)
    b_mat = (eye[:, :, None] * w10[None, None, :]
             + nxt[:, :, None] * w11[None, None, :]).reshape(E, E * C)
    cb_flat = jnp.tile(params["conv_b"].astype(jnp.float32), E).reshape(1, E * C)
    # torch flatten order is c*(E-1)+w -> lw_flat[w*C + c]; zero row at w=E-1.
    lw_wc = jnp.pad(params["lin_w"].astype(jnp.float32).reshape(C, E - 1).T,
                    ((0, 1), (0, 0)))                # (E, C)
    lw_flat = lw_wc.reshape(1, E * C)
    lb = params["lin_b"].reshape(1, 1).astype(jnp.float32)

    grid_spec = pltpu.PrefetchScalarGridSpec(
        num_scalar_prefetch=2,
        grid=(num_tiles,),
        in_specs=[
            pl.BlockSpec(memory_space=pl.ANY),                    # user table (HBM)
            pl.BlockSpec(memory_space=pl.ANY),                    # item table (HBM)
            pl.BlockSpec((E, E * C), lambda i, *_: (0, 0)),       # packed conv A
            pl.BlockSpec((E, E * C), lambda i, *_: (0, 0)),       # packed conv B
            pl.BlockSpec((1, E * C), lambda i, *_: (0, 0)),       # conv bias (flat)
            pl.BlockSpec((1, E * C), lambda i, *_: (0, 0)),       # linear weights (flat)
            pl.BlockSpec(memory_space=pltpu.MemorySpace.SMEM),    # linear bias
        ],
        out_specs=pl.BlockSpec((1, 1, block_b), lambda i, *_: (i, 0, 0)),
        scratch_shapes=[
            pltpu.VMEM((block_b, E), jnp.float32),    # gathered user rows
            pltpu.VMEM((block_b, E), jnp.float32),    # gathered item rows
            pltpu.SemaphoreType.DMA((2, block_b)),    # one sem per row DMA
        ],
    )

    out = pl.pallas_call(
        uinet_kernel,
        out_shape=jax.ShapeDtypeStruct((num_tiles, 1, block_b), jnp.float32),
        grid_spec=grid_spec,
        compiler_params=pltpu.CompilerParams(
            dimension_semantics=("parallel",)),
    )(uid, vid,
      params["embedding_user"].astype(jnp.float32),
      params["embedding_item"].astype(jnp.float32),
      a_mat, b_mat, cb_flat, lw_flat, lb)

    # lane-dense (num_tiles, 1, BM) -> (B, 1)
    return out.reshape(b_pad, 1)[:B]


def uinet_reference_forward(x, params):
    """Pure-JAX reference mirroring the PyTorch forward exactly."""
    u = params["embedding_user"][x[:, 0]]            # (B, E)
    v = params["embedding_item"][x[:, 1]]            # (B, E)
    _ = params["embedding_item"][x[:, 2]]            # unused, as in reference
    W = params["conv_w"]                             # (C, 1, 2, 2)
    b = params["conv_b"]                             # (C,)
    conv = (W[:, 0, 0, 0][None, :, None] * u[:, None, :-1]
            + W[:, 0, 0, 1][None, :, None] * u[:, None, 1:]
            + W[:, 0, 1, 0][None, :, None] * v[:, None, :-1]
            + W[:, 0, 1, 1][None, :, None] * v[:, None, 1:]
            + b[None, :, None])                      # (B, C, E-1)
    act = jnp.maximum(conv, 0.0)
    flat = act.reshape(x.shape[0], -1)               # (B, C*(E-1)), c-major
    y = jnp.matmul(flat, params["lin_w"].T,
                   precision=jax.lax.Precision.HIGHEST)
    return y + params["lin_b"]


if __name__ == "__main__":
    # Small, module-consistent shapes; B=32 with BM=8 exercises a 4-step grid.
    num_users, num_items = 10, 12
    B, E, C, n_class = 32, 16, 64, 1   # embedding_size=16, out_channels=64, k=2

    key = jax.random.PRNGKey(0)
    ks = jax.random.split(key, 8)
    params = {
        "embedding_user": jax.random.normal(ks[0], (num_users, E), jnp.float32) * 0.1,
        "embedding_item": jax.random.normal(ks[1], (num_items, E), jnp.float32) * 0.1,
        "conv_w": jax.random.normal(ks[2], (C, 1, 2, 2), jnp.float32) * 0.5,
        "conv_b": jax.random.normal(ks[3], (C,), jnp.float32) * 0.1,
        "lin_w": jax.random.normal(ks[4], (n_class, C * (E - 1)), jnp.float32) * 0.05,
        "lin_b": jax.random.normal(ks[5], (n_class,), jnp.float32) * 0.1,
    }

    users = jax.random.randint(ks[6], (B,), 0, num_users, dtype=jnp.int32)
    items = jax.random.randint(ks[7], (B,), 0, num_items, dtype=jnp.int32)
    x = jnp.stack([users, items, items], axis=1)     # (B, 3) int32

    out = jax.jit(uinet_pallas_forward)(x, params)
    out = jax.block_until_ready(out)

    ref = uinet_reference_forward(x, params)
    assert out.shape == (B, n_class)
    assert jnp.allclose(out, ref, atol=1e-3, rtol=1e-3), (out, ref)
    print("KERNEL_OK")
</pallas_src>

<mosaic_0001>
module attributes {stable_mosaic.version = 11 : i64} {
  func.func @uinet_kernel(%arg0: i32, %arg1: memref<32xi32, #tpu.memory_space<smem>>, %arg2: memref<32xi32, #tpu.memory_space<smem>>, %arg3: memref<10x16xf32, #tpu.memory_space<any>>, %arg4: memref<12x16xf32, #tpu.memory_space<any>>, %arg5: memref<16x1024xf32, #tpu.memory_space<vmem>>, %arg6: memref<16x1024xf32, #tpu.memory_space<vmem>>, %arg7: memref<1x1024xf32, #tpu.memory_space<vmem>>, %arg8: memref<1x1024xf32, #tpu.memory_space<vmem>>, %arg9: memref<1x1xf32, #tpu.memory_space<smem>>, %arg10: memref<1x1x8xf32, #tpu.memory_space<vmem>>, %arg11: memref<8x16xf32, #tpu.memory_space<vmem>>, %arg12: memref<8x16xf32, #tpu.memory_space<vmem>>, %arg13: memref<2x8x!tpu.dma_semaphore, #tpu.memory_space<semaphore_mem>>) attributes {dimension_semantics = [#tpu.dimension_semantics<parallel>], iteration_bounds = array<i64: 4>, scalar_prefetch = 2 : i64, scratch_operands = 3 : i64, tpu.core_type = #tpu.core_type<tc>, window_params = [{}, {}, {pipeline_mode = #tpu.pipeline_mode<synchronous>, transform_indices = @transform_2, window_bounds = array<i64: 16, 1024>}, {pipeline_mode = #tpu.pipeline_mode<synchronous>, transform_indices = @transform_3, window_bounds = array<i64: 16, 1024>}, {pipeline_mode = #tpu.pipeline_mode<synchronous>, transform_indices = @transform_4, window_bounds = array<i64: 1, 1024>}, {pipeline_mode = #tpu.pipeline_mode<synchronous>, transform_indices = @transform_5, window_bounds = array<i64: 1, 1024>}, {transform_indices = @transform_6, window_bounds = array<i64: 1, 1>}, {transform_indices = @transform_7, window_bounds = array<i64: 1, 1, 8>}]} {
    %c8_i32 = arith.constant 8 : i32
    %0 = arith.muli %arg0, %c8_i32 : i32
    %c0_i32 = arith.constant 0 : i32
    %1 = arith.addi %0, %c0_i32 : i32
    %2 = arith.index_cast %1 : i32 to index
    %3 = memref.load %arg1[%2] : memref<32xi32, #tpu.memory_space<smem>>
    %c0_i32_0 = arith.constant 0 : i32
    %4 = arith.addi %0, %c0_i32_0 : i32
    %5 = arith.index_cast %4 : i32 to index
    %6 = memref.load %arg2[%5] : memref<32xi32, #tpu.memory_space<smem>>
    %c0_i32_1 = arith.constant 0 : i32
    %c0_i32_2 = arith.constant 0 : i32
    %c0_i32_3 = arith.constant 0 : i32
    %7 = tpu.memref_slice %arg3[%3, %c0_i32_3] : memref<10x16xf32, #tpu.memory_space<any>> -> memref<1x16xf32, #tpu.memory_space<any>>
    %c0_i32_4 = arith.constant 0 : i32
    %c0_i32_5 = arith.constant 0 : i32
    %8 = tpu.memref_slice %arg11[%c0_i32_4, %c0_i32_5] : memref<8x16xf32, #tpu.memory_space<vmem>> -> memref<1x16xf32, #tpu.memory_space<vmem>>
    %9 = tpu.memref_slice %arg13[%c0_i32_1, %c0_i32_2] : memref<2x8x!tpu.dma_semaphore, #tpu.memory_space<semaphore_mem>> -> memref<1x1x!tpu.dma_semaphore, #tpu.memory_space<semaphore_mem>>
    %10 = tpu.memref_squeeze %9 : memref<1x1x!tpu.dma_semaphore, #tpu.memory_space<semaphore_mem>> -> memref<!tpu.dma_semaphore, #tpu.memory_space<semaphore_mem>>
    tpu.enqueue_dma source(%7 : memref<1x16xf32, #tpu.memory_space<any>>) target(%8 : memref<1x16xf32, #tpu.memory_space<vmem>>) target_semaphore(%10 : memref<!tpu.dma_semaphore, #tpu.memory_space<semaphore_mem>>)
    %c1_i32 = arith.constant 1 : i32
    %c0_i32_6 = arith.constant 0 : i32
    %c0_i32_7 = arith.constant 0 : i32
    %11 = tpu.memref_slice %arg4[%6, %c0_i32_7] : memref<12x16xf32, #tpu.memory_space<any>> -> memref<1x16xf32, #tpu.memory_space<any>>
    %c0_i32_8 = arith.constant 0 : i32
    %c0_i32_9 = arith.constant 0 : i32
    %12 = tpu.memref_slice %arg12[%c0_i32_8, %c0_i32_9] : memref<8x16xf32, #tpu.memory_space<vmem>> -> memref<1x16xf32, #tpu.memory_space<vmem>>
    %13 = tpu.memref_slice %arg13[%c1_i32, %c0_i32_6] : memref<2x8x!tpu.dma_semaphore, #tpu.memory_space<semaphore_mem>> -> memref<1x1x!tpu.dma_semaphore, #tpu.memory_space<semaphore_mem>>
    %14 = tpu.memref_squeeze %13 : memref<1x1x!tpu.dma_semaphore, #tpu.memory_space<semaphore_mem>> -> memref<!tpu.dma_semaphore, #tpu.memory_space<semaphore_mem>>
    tpu.enqueue_dma source(%11 : memref<1x16xf32, #tpu.memory_space<any>>) target(%12 : memref<1x16xf32, #tpu.memory_space<vmem>>) target_semaphore(%14 : memref<!tpu.dma_semaphore, #tpu.memory_space<semaphore_mem>>)
    %c1_i32_10 = arith.constant 1 : i32
    %15 = arith.addi %0, %c1_i32_10 : i32
    %16 = arith.index_cast %15 : i32 to index
    %17 = memref.load %arg1[%16] : memref<32xi32, #tpu.memory_space<smem>>
    %c1_i32_11 = arith.constant 1 : i32
    %18 = arith.addi %0, %c1_i32_11 : i32
    %19 = arith.index_cast %18 : i32 to index
    %20 = memref.load %arg2[%19] : memref<32xi32, #tpu.memory_space<smem>>
    %c0_i32_12 = arith.constant 0 : i32
    %c1_i32_13 = arith.constant 1 : i32
    %c0_i32_14 = arith.constant 0 : i32
    %21 = tpu.memref_slice %arg3[%17, %c0_i32_14] : memref<10x16xf32, #tpu.memory_space<any>> -> memref<1x16xf32, #tpu.memory_space<any>>
    %c1_i32_15 = arith.constant 1 : i32
    %c0_i32_16 = arith.constant 0 : i32
    %22 = tpu.memref_slice %arg11[%c1_i32_15, %c0_i32_16] : memref<8x16xf32, #tpu.memory_space<vmem>> -> memref<1x16xf32, #tpu.memory_space<vmem>>
    %23 = tpu.memref_slice %arg13[%c0_i32_12, %c1_i32_13] : memref<2x8x!tpu.dma_semaphore, #tpu.memory_space<semaphore_mem>> -> memref<1x1x!tpu.dma_semaphore, #tpu.memory_space<semaphore_mem>>
    %24 = tpu.memref_squeeze %23 : memref<1x1x!tpu.dma_semaphore, #tpu.memory_space<semaphore_mem>> -> memref<!tpu.dma_semaphore, #tpu.memory_space<semaphore_mem>>
    tpu.enqueue_dma source(%21 : memref<1x16xf32, #tpu.memory_space<any>>) target(%22 : memref<1x16xf32, #tpu.memory_space<vmem>>) target_semaphore(%24 : memref<!tpu.dma_semaphore, #tpu.memory_space<semaphore_mem>>)
    %c1_i32_17 = arith.constant 1 : i32
    %c1_i32_18 = arith.constant 1 : i32
    %c0_i32_19 = arith.constant 0 : i32
    %25 = tpu.memref_slice %arg4[%20, %c0_i32_19] : memref<12x16xf32, #tpu.memory_space<any>> -> memref<1x16xf32, #tpu.memory_space<any>>
    %c1_i32_20 = arith.constant 1 : i32
    %c0_i32_21 = arith.constant 0 : i32
    %26 = tpu.memref_slice %arg12[%c1_i32_20, %c0_i32_21] : memref<8x16xf32, #tpu.memory_space<vmem>> -> memref<1x16xf32, #tpu.memory_space<vmem>>
    %27 = tpu.memref_slice %arg13[%c1_i32_17, %c1_i32_18] : memref<2x8x!tpu.dma_semaphore, #tpu.memory_space<semaphore_mem>> -> memref<1x1x!tpu.dma_semaphore, #tpu.memory_space<semaphore_mem>>
    %28 = tpu.memref_squeeze %27 : memref<1x1x!tpu.dma_semaphore, #tpu.memory_space<semaphore_mem>> -> memref<!tpu.dma_semaphore, #tpu.memory_space<semaphore_mem>>
    tpu.enqueue_dma source(%25 : memref<1x16xf32, #tpu.memory_space<any>>) target(%26 : memref<1x16xf32, #tpu.memory_space<vmem>>) target_semaphore(%28 : memref<!tpu.dma_semaphore, #tpu.memory_space<semaphore_mem>>)
    %c2_i32 = arith.constant 2 : i32
    %29 = arith.addi %0, %c2_i32 : i32
    %30 = arith.index_cast %29 : i32 to index
    %31 = memref.load %arg1[%30] : memref<32xi32, #tpu.memory_space<smem>>
    %c2_i32_22 = arith.constant 2 : i32
    %32 = arith.addi %0, %c2_i32_22 : i32
    %33 = arith.index_cast %32 : i32 to index
    %34 = memref.load %arg2[%33] : memref<32xi32, #tpu.memory_space<smem>>
    %c0_i32_23 = arith.constant 0 : i32
    %c2_i32_24 = arith.constant 2 : i32
    %c0_i32_25 = arith.constant 0 : i32
    %35 = tpu.memref_slice %arg3[%31, %c0_i32_25] : memref<10x16xf32, #tpu.memory_space<any>> -> memref<1x16xf32, #tpu.memory_space<any>>
    %c2_i32_26 = arith.constant 2 : i32
    %c0_i32_27 = arith.constant 0 : i32
    %36 = tpu.memref_slice %arg11[%c2_i32_26, %c0_i32_27] : memref<8x16xf32, #tpu.memory_space<vmem>> -> memref<1x16xf32, #tpu.memory_space<vmem>>
    %37 = tpu.memref_slice %arg13[%c0_i32_23, %c2_i32_24] : memref<2x8x!tpu.dma_semaphore, #tpu.memory_space<semaphore_mem>> -> memref<1x1x!tpu.dma_semaphore, #tpu.memory_space<semaphore_mem>>
    %38 = tpu.memref_squeeze %37 : memref<1x1x!tpu.dma_semaphore, #tpu.memory_space<semaphore_mem>> -> memref<!tpu.dma_semaphore, #tpu.memory_space<semaphore_mem>>
    tpu.enqueue_dma source(%35 : memref<1x16xf32, #tpu.memory_space<any>>) target(%36 : memref<1x16xf32, #tpu.memory_space<vmem>>) target_semaphore(%38 : memref<!tpu.dma_semaphore, #tpu.memory_space<semaphore_mem>>)
    %c1_i32_28 = arith.constant 1 : i32
    %c2_i32_29 = arith.constant 2 : i32
    %c0_i32_30 = arith.constant 0 : i32
    %39 = tpu.memref_slice %arg4[%34, %c0_i32_30] : memref<12x16xf32, #tpu.memory_space<any>> -> memref<1x16xf32, #tpu.memory_space<any>>
    %c2_i32_31 = arith.constant 2 : i32
    %c0_i32_32 = arith.constant 0 : i32
    %40 = tpu.memref_slice %arg12[%c2_i32_31, %c0_i32_32] : memref<8x16xf32, #tpu.memory_space<vmem>> -> memref<1x16xf32, #tpu.memory_space<vmem>>
    %41 = tpu.memref_slice %arg13[%c1_i32_28, %c2_i32_29] : memref<2x8x!tpu.dma_semaphore, #tpu.memory_space<semaphore_mem>> -> memref<1x1x!tpu.dma_semaphore, #tpu.memory_space<semaphore_mem>>
    %42 = tpu.memref_squeeze %41 : memref<1x1x!tpu.dma_semaphore, #tpu.memory_space<semaphore_mem>> -> memref<!tpu.dma_semaphore, #tpu.memory_space<semaphore_mem>>
    tpu.enqueue_dma source(%39 : memref<1x16xf32, #tpu.memory_space<any>>) target(%40 : memref<1x16xf32, #tpu.memory_space<vmem>>) target_semaphore(%42 : memref<!tpu.dma_semaphore, #tpu.memory_space<semaphore_mem>>)
    %c3_i32 = arith.constant 3 : i32
    %43 = arith.addi %0, %c3_i32 : i32
    %44 = arith.index_cast %43 : i32 to index
    %45 = memref.load %arg1[%44] : memref<32xi32, #tpu.memory_space<smem>>
    %c3_i32_33 = arith.constant 3 : i32
    %46 = arith.addi %0, %c3_i32_33 : i32
    %47 = arith.index_cast %46 : i32 to index
    %48 = memref.load %arg2[%47] : memref<32xi32, #tpu.memory_space<smem>>
    %c0_i32_34 = arith.constant 0 : i32
    %c3_i32_35 = arith.constant 3 : i32
    %c0_i32_36 = arith.constant 0 : i32
    %49 = tpu.memref_slice %arg3[%45, %c0_i32_36] : memref<10x16xf32, #tpu.memory_space<any>> -> memref<1x16xf32, #tpu.memory_space<any>>
    %c3_i32_37 = arith.constant 3 : i32
    %c0_i32_38 = arith.constant 0 : i32
    %50 = tpu.memref_slice %arg11[%c3_i32_37, %c0_i32_38] : memref<8x16xf32, #tpu.memory_space<vmem>> -> memref<1x16xf32, #tpu.memory_space<vmem>>
    %51 = tpu.memref_slice %arg13[%c0_i32_34, %c3_i32_35] : memref<2x8x!tpu.dma_semaphore, #tpu.memory_space<semaphore_mem>> -> memref<1x1x!tpu.dma_semaphore, #tpu.memory_space<semaphore_mem>>
    %52 = tpu.memref_squeeze %51 : memref<1x1x!tpu.dma_semaphore, #tpu.memory_space<semaphore_mem>> -> memref<!tpu.dma_semaphore, #tpu.memory_space<semaphore_mem>>
    tpu.enqueue_dma source(%49 : memref<1x16xf32, #tpu.memory_space<any>>) target(%50 : memref<1x16xf32, #tpu.memory_space<vmem>>) target_semaphore(%52 : memref<!tpu.dma_semaphore, #tpu.memory_space<semaphore_mem>>)
    %c1_i32_39 = arith.constant 1 : i32
    %c3_i32_40 = arith.constant 3 : i32
    %c0_i32_41 = arith.constant 0 : i32
    %53 = tpu.memref_slice %arg4[%48, %c0_i32_41] : memref<12x16xf32, #tpu.memory_space<any>> -> memref<1x16xf32, #tpu.memory_space<any>>
    %c3_i32_42 = arith.constant 3 : i32
    %c0_i32_43 = arith.constant 0 : i32
    %54 = tpu.memref_slice %arg12[%c3_i32_42, %c0_i32_43] : memref<8x16xf32, #tpu.memory_space<vmem>> -> memref<1x16xf32, #tpu.memory_space<vmem>>
    %55 = tpu.memref_slice %arg13[%c1_i32_39, %c3_i32_40] : memref<2x8x!tpu.dma_semaphore, #tpu.memory_space<semaphore_mem>> -> memref<1x1x!tpu.dma_semaphore, #tpu.memory_space<semaphore_mem>>
    %56 = tpu.memref_squeeze %55 : memref<1x1x!tpu.dma_semaphore, #tpu.memory_space<semaphore_mem>> -> memref<!tpu.dma_semaphore, #tpu.memory_space<semaphore_mem>>
    tpu.enqueue_dma source(%53 : memref<1x16xf32, #tpu.memory_space<any>>) target(%54 : memref<1x16xf32, #tpu.memory_space<vmem>>) target_semaphore(%56 : memref<!tpu.dma_semaphore, #tpu.memory_space<semaphore_mem>>)
    %c4_i32 = arith.constant 4 : i32
    %57 = arith.addi %0, %c4_i32 : i32
    %58 = arith.index_cast %57 : i32 to index
    %59 = memref.load %arg1[%58] : memref<32xi32, #tpu.memory_space<smem>>
    %c4_i32_44 = arith.constant 4 : i32
    %60 = arith.addi %0, %c4_i32_44 : i32
    %61 = arith.index_cast %60 : i32 to index
    %62 = memref.load %arg2[%61] : memref<32xi32, #tpu.memory_space<smem>>
    %c0_i32_45 = arith.constant 0 : i32
    %c4_i32_46 = arith.constant 4 : i32
    %c0_i32_47 = arith.constant 0 : i32
    %63 = tpu.memref_slice %arg3[%59, %c0_i32_47] : memref<10x16xf32, #tpu.memory_space<any>> -> memref<1x16xf32, #tpu.memory_space<any>>
    %c4_i32_48 = arith.constant 4 : i32
    %c0_i32_49 = arith.constant 0 : i32
    %64 = tpu.memref_slice %arg11[%c4_i32_48, %c0_i32_49] : memref<8x16xf32, #tpu.memory_space<vmem>> -> memref<1x16xf32, #tpu.memory_space<vmem>>
    %65 = tpu.memref_slice %arg13[%c0_i32_45, %c4_i32_46] : memref<2x8x!tpu.dma_semaphore, #tpu.memory_space<semaphore_mem>> -> memref<1x1x!tpu.dma_semaphore, #tpu.memory_space<semaphore_mem>>
    %66 = tpu.memref_squeeze %65 : memref<1x1x!tpu.dma_semaphore, #tpu.memory_space<semaphore_mem>> -> memref<!tpu.dma_semaphore, #tpu.memory_space<semaphore_mem>>
    tpu.enqueue_dma source(%63 : memref<1x16xf32, #tpu.memory_space<any>>) target(%64 : memref<1x16xf32, #tpu.memory_space<vmem>>) target_semaphore(%66 : memref<!tpu.dma_semaphore, #tpu.memory_space<semaphore_mem>>)
    %c1_i32_50 = arith.constant 1 : i32
    %c4_i32_51 = arith.constant 4 : i32
    %c0_i32_52 = arith.constant 0 : i32
    %67 = tpu.memref_slice %arg4[%62, %c0_i32_52] : memref<12x16xf32, #tpu.memory_space<any>> -> memref<1x16xf32, #tpu.memory_space<any>>
    %c4_i32_53 = arith.constant 4 : i32
    %c0_i32_54 = arith.constant 0 : i32
    %68 = tpu.memref_slice %arg12[%c4_i32_53, %c0_i32_54] : memref<8x16xf32, #tpu.memory_space<vmem>> -> memref<1x16xf32, #tpu.memory_space<vmem>>
    %69 = tpu.memref_slice %arg13[%c1_i32_50, %c4_i32_51] : memref<2x8x!tpu.dma_semaphore, #tpu.memory_space<semaphore_mem>> -> memref<1x1x!tpu.dma_semaphore, #tpu.memory_space<semaphore_mem>>
    %70 = tpu.memref_squeeze %69 : memref<1x1x!tpu.dma_semaphore, #tpu.memory_space<semaphore_mem>> -> memref<!tpu.dma_semaphore, #tpu.memory_space<semaphore_mem>>
    tpu.enqueue_dma source(%67 : memref<1x16xf32, #tpu.memory_space<any>>) target(%68 : memref<1x16xf32, #tpu.memory_space<vmem>>) target_semaphore(%70 : memref<!tpu.dma_semaphore, #tpu.memory_space<semaphore_mem>>)
    %c5_i32 = arith.constant 5 : i32
    %71 = arith.addi %0, %c5_i32 : i32
    %72 = arith.index_cast %71 : i32 to index
    %73 = memref.load %arg1[%72] : memref<32xi32, #tpu.memory_space<smem>>
    %c5_i32_55 = arith.constant 5 : i32
    %74 = arith.addi %0, %c5_i32_55 : i32
    %75 = arith.index_cast %74 : i32 to index
    %76 = memref.load %arg2[%75] : memref<32xi32, #tpu.memory_space<smem>>
    %c0_i32_56 = arith.constant 0 : i32
    %c5_i32_57 = arith.constant 5 : i32
    %c0_i32_58 = arith.constant 0 : i32
    %77 = tpu.memref_slice %arg3[%73, %c0_i32_58] : memref<10x16xf32, #tpu.memory_space<any>> -> memref<1x16xf32, #tpu.memory_space<any>>
    %c5_i32_59 = arith.constant 5 : i32
    %c0_i32_60 = arith.constant 0 : i32
    %78 = tpu.memref_slice %arg11[%c5_i32_59, %c0_i32_60] : memref<8x16xf32, #tpu.memory_space<vmem>> -> memref<1x16xf32, #tpu.memory_space<vmem>>
    %79 = tpu.memref_slice %arg13[%c0_i32_56, %c5_i32_57] : memref<2x8x!tpu.dma_semaphore, #tpu.memory_space<semaphore_mem>> -> memref<1x1x!tpu.dma_semaphore, #tpu.memory_space<semaphore_mem>>
    %80 = tpu.memref_squeeze %79 : memref<1x1x!tpu.dma_semaphore, #tpu.memory_space<semaphore_mem>> -> memref<!tpu.dma_semaphore, #tpu.memory_space<semaphore_mem>>
    tpu.enqueue_dma source(%77 : memref<1x16xf32, #tpu.memory_space<any>>) target(%78 : memref<1x16xf32, #tpu.memory_space<vmem>>) target_semaphore(%80 : memref<!tpu.dma_semaphore, #tpu.memory_space<semaphore_mem>>)
    %c1_i32_61 = arith.constant 1 : i32
    %c5_i32_62 = arith.constant 5 : i32
    %c0_i32_63 = arith.constant 0 : i32
    %81 = tpu.memref_slice %arg4[%76, %c0_i32_63] : memref<12x16xf32, #tpu.memory_space<any>> -> memref<1x16xf32, #tpu.memory_space<any>>
    %c5_i32_64 = arith.constant 5 : i32
    %c0_i32_65 = arith.constant 0 : i32
    %82 = tpu.memref_slice %arg12[%c5_i32_64, %c0_i32_65] : memref<8x16xf32, #tpu.memory_space<vmem>> -> memref<1x16xf32, #tpu.memory_space<vmem>>
    %83 = tpu.memref_slice %arg13[%c1_i32_61, %c5_i32_62] : memref<2x8x!tpu.dma_semaphore, #tpu.memory_space<semaphore_mem>> -> memref<1x1x!tpu.dma_semaphore, #tpu.memory_space<semaphore_mem>>
    %84 = tpu.memref_squeeze %83 : memref<1x1x!tpu.dma_semaphore, #tpu.memory_space<semaphore_mem>> -> memref<!tpu.dma_semaphore, #tpu.memory_space<semaphore_mem>>
    tpu.enqueue_dma source(%81 : memref<1x16xf32, #tpu.memory_space<any>>) target(%82 : memref<1x16xf32, #tpu.memory_space<vmem>>) target_semaphore(%84 : memref<!tpu.dma_semaphore, #tpu.memory_space<semaphore_mem>>)
    %c6_i32 = arith.constant 6 : i32
    %85 = arith.addi %0, %c6_i32 : i32
    %86 = arith.index_cast %85 : i32 to index
    %87 = memref.load %arg1[%86] : memref<32xi32, #tpu.memory_space<smem>>
    %c6_i32_66 = arith.constant 6 : i32
    %88 = arith.addi %0, %c6_i32_66 : i32
    %89 = arith.index_cast %88 : i32 to index
    %90 = memref.load %arg2[%89] : memref<32xi32, #tpu.memory_space<smem>>
    %c0_i32_67 = arith.constant 0 : i32
    %c6_i32_68 = arith.constant 6 : i32
    %c0_i32_69 = arith.constant 0 : i32
    %91 = tpu.memref_slice %arg3[%87, %c0_i32_69] : memref<10x16xf32, #tpu.memory_space<any>> -> memref<1x16xf32, #tpu.memory_space<any>>
    %c6_i32_70 = arith.constant 6 : i32
    %c0_i32_71 = arith.constant 0 : i32
    %92 = tpu.memref_slice %arg11[%c6_i32_70, %c0_i32_71] : memref<8x16xf32, #tpu.memory_space<vmem>> -> memref<1x16xf32, #tpu.memory_space<vmem>>
    %93 = tpu.memref_slice %arg13[%c0_i32_67, %c6_i32_68] : memref<2x8x!tpu.dma_semaphore, #tpu.memory_space<semaphore_mem>> -> memref<1x1x!tpu.dma_semaphore, #tpu.memory_space<semaphore_mem>>
    %94 = tpu.memref_squeeze %93 : memref<1x1x!tpu.dma_semaphore, #tpu.memory_space<semaphore_mem>> -> memref<!tpu.dma_semaphore, #tpu.memory_space<semaphore_mem>>
    tpu.enqueue_dma source(%91 : memref<1x16xf32, #tpu.memory_space<any>>) target(%92 : memref<1x16xf32, #tpu.memory_space<vmem>>) target_semaphore(%94 : memref<!tpu.dma_semaphore, #tpu.memory_space<semaphore_mem>>)
    %c1_i32_72 = arith.constant 1 : i32
    %c6_i32_73 = arith.constant 6 : i32
    %c0_i32_74 = arith.constant 0 : i32
    %95 = tpu.memref_slice %arg4[%90, %c0_i32_74] : memref<12x16xf32, #tpu.memory_space<any>> -> memref<1x16xf32, #tpu.memory_space<any>>
    %c6_i32_75 = arith.constant 6 : i32
    %c0_i32_76 = arith.constant 0 : i32
    %96 = tpu.memref_slice %arg12[%c6_i32_75, %c0_i32_76] : memref<8x16xf32, #tpu.memory_space<vmem>> -> memref<1x16xf32, #tpu.memory_space<vmem>>
    %97 = tpu.memref_slice %arg13[%c1_i32_72, %c6_i32_73] : memref<2x8x!tpu.dma_semaphore, #tpu.memory_space<semaphore_mem>> -> memref<1x1x!tpu.dma_semaphore, #tpu.memory_space<semaphore_mem>>
    %98 = tpu.memref_squeeze %97 : memref<1x1x!tpu.dma_semaphore, #tpu.memory_space<semaphore_mem>> -> memref<!tpu.dma_semaphore, #tpu.memory_space<semaphore_mem>>
    tpu.enqueue_dma source(%95 : memref<1x16xf32, #tpu.memory_space<any>>) target(%96 : memref<1x16xf32, #tpu.memory_space<vmem>>) target_semaphore(%98 : memref<!tpu.dma_semaphore, #tpu.memory_space<semaphore_mem>>)
    %c7_i32 = arith.constant 7 : i32
    %99 = arith.addi %0, %c7_i32 : i32
    %100 = arith.index_cast %99 : i32 to index
    %101 = memref.load %arg1[%100] : memref<32xi32, #tpu.memory_space<smem>>
    %c7_i32_77 = arith.constant 7 : i32
    %102 = arith.addi %0, %c7_i32_77 : i32
    %103 = arith.index_cast %102 : i32 to index
    %104 = memref.load %arg2[%103] : memref<32xi32, #tpu.memory_space<smem>>
    %c0_i32_78 = arith.constant 0 : i32
    %c7_i32_79 = arith.constant 7 : i32
    %c0_i32_80 = arith.constant 0 : i32
    %105 = tpu.memref_slice %arg3[%101, %c0_i32_80] : memref<10x16xf32, #tpu.memory_space<any>> -> memref<1x16xf32, #tpu.memory_space<any>>
    %c7_i32_81 = arith.constant 7 : i32
    %c0_i32_82 = arith.constant 0 : i32
    %106 = tpu.memref_slice %arg11[%c7_i32_81, %c0_i32_82] : memref<8x16xf32, #tpu.memory_space<vmem>> -> memref<1x16xf32, #tpu.memory_space<vmem>>
    %107 = tpu.memref_slice %arg13[%c0_i32_78, %c7_i32_79] : memref<2x8x!tpu.dma_semaphore, #tpu.memory_space<semaphore_mem>> -> memref<1x1x!tpu.dma_semaphore, #tpu.memory_space<semaphore_mem>>
    %108 = tpu.memref_squeeze %107 : memref<1x1x!tpu.dma_semaphore, #tpu.memory_space<semaphore_mem>> -> memref<!tpu.dma_semaphore, #tpu.memory_space<semaphore_mem>>
    tpu.enqueue_dma source(%105 : memref<1x16xf32, #tpu.memory_space<any>>) target(%106 : memref<1x16xf32, #tpu.memory_space<vmem>>) target_semaphore(%108 : memref<!tpu.dma_semaphore, #tpu.memory_space<semaphore_mem>>)
    %c1_i32_83 = arith.constant 1 : i32
    %c7_i32_84 = arith.constant 7 : i32
    %c0_i32_85 = arith.constant 0 : i32
    %109 = tpu.memref_slice %arg4[%104, %c0_i32_85] : memref<12x16xf32, #tpu.memory_space<any>> -> memref<1x16xf32, #tpu.memory_space<any>>
    %c7_i32_86 = arith.constant 7 : i32
    %c0_i32_87 = arith.constant 0 : i32
    %110 = tpu.memref_slice %arg12[%c7_i32_86, %c0_i32_87] : memref<8x16xf32, #tpu.memory_space<vmem>> -> memref<1x16xf32, #tpu.memory_space<vmem>>
    %111 = tpu.memref_slice %arg13[%c1_i32_83, %c7_i32_84] : memref<2x8x!tpu.dma_semaphore, #tpu.memory_space<semaphore_mem>> -> memref<1x1x!tpu.dma_semaphore, #tpu.memory_space<semaphore_mem>>
    %112 = tpu.memref_squeeze %111 : memref<1x1x!tpu.dma_semaphore, #tpu.memory_space<semaphore_mem>> -> memref<!tpu.dma_semaphore, #tpu.memory_space<semaphore_mem>>
    tpu.enqueue_dma source(%109 : memref<1x16xf32, #tpu.memory_space<any>>) target(%110 : memref<1x16xf32, #tpu.memory_space<vmem>>) target_semaphore(%112 : memref<!tpu.dma_semaphore, #tpu.memory_space<semaphore_mem>>)
    %c0_i32_88 = arith.constant 0 : i32
    %c0_i32_89 = arith.constant 0 : i32
    %c0_i32_90 = arith.constant 0 : i32
    %113 = tpu.memref_slice %arg3[%3, %c0_i32_90] : memref<10x16xf32, #tpu.memory_space<any>> -> memref<1x16xf32, #tpu.memory_space<any>>
    %c0_i32_91 = arith.constant 0 : i32
    %c0_i32_92 = arith.constant 0 : i32
    %114 = tpu.memref_slice %arg11[%c0_i32_91, %c0_i32_92] : memref<8x16xf32, #tpu.memory_space<vmem>> -> memref<1x16xf32, #tpu.memory_space<vmem>>
    %115 = tpu.memref_slice %arg13[%c0_i32_88, %c0_i32_89] : memref<2x8x!tpu.dma_semaphore, #tpu.memory_space<semaphore_mem>> -> memref<1x1x!tpu.dma_semaphore, #tpu.memory_space<semaphore_mem>>
    %116 = tpu.memref_squeeze %115 : memref<1x1x!tpu.dma_semaphore, #tpu.memory_space<semaphore_mem>> -> memref<!tpu.dma_semaphore, #tpu.memory_space<semaphore_mem>>
    tpu.wait_dma2 semaphore(%116 : memref<!tpu.dma_semaphore, #tpu.memory_space<semaphore_mem>>) src(%113 : memref<1x16xf32, #tpu.memory_space<any>>) dst(%114 : memref<1x16xf32, #tpu.memory_space<vmem>>)
    %c1_i32_93 = arith.constant 1 : i32
    %c0_i32_94 = arith.constant 0 : i32
    %c0_i32_95 = arith.constant 0 : i32
    %117 = tpu.memref_slice %arg4[%6, %c0_i32_95] : memref<12x16xf32, #tpu.memory_space<any>> -> memref<1x16xf32, #tpu.memory_space<any>>
    %c0_i32_96 = arith.constant 0 : i32
    %c0_i32_97 = arith.constant 0 : i32
    %118 = tpu.memref_slice %arg12[%c0_i32_96, %c0_i32_97] : memref<8x16xf32, #tpu.memory_space<vmem>> -> memref<1x16xf32, #tpu.memory_space<vmem>>
    %119 = tpu.memref_slice %arg13[%c1_i32_93, %c0_i32_94] : memref<2x8x!tpu.dma_semaphore, #tpu.memory_space<semaphore_mem>> -> memref<1x1x!tpu.dma_semaphore, #tpu.memory_space<semaphore_mem>>
    %120 = tpu.memref_squeeze %119 : memref<1x1x!tpu.dma_semaphore, #tpu.memory_space<semaphore_mem>> -> memref<!tpu.dma_semaphore, #tpu.memory_space<semaphore_mem>>
    tpu.wait_dma2 semaphore(%120 : memref<!tpu.dma_semaphore, #tpu.memory_space<semaphore_mem>>) src(%117 : memref<1x16xf32, #tpu.memory_space<any>>) dst(%118 : memref<1x16xf32, #tpu.memory_space<vmem>>)
    %c0_i32_98 = arith.constant 0 : i32
    %c1_i32_99 = arith.constant 1 : i32
    %c0_i32_100 = arith.constant 0 : i32
    %121 = tpu.memref_slice %arg3[%17, %c0_i32_100] : memref<10x16xf32, #tpu.memory_space<any>> -> memref<1x16xf32, #tpu.memory_space<any>>
    %c1_i32_101 = arith.constant 1 : i32
    %c0_i32_102 = arith.constant 0 : i32
    %122 = tpu.memref_slice %arg11[%c1_i32_101, %c0_i32_102] : memref<8x16xf32, #tpu.memory_space<vmem>> -> memref<1x16xf32, #tpu.memory_space<vmem>>
    %123 = tpu.memref_slice %arg13[%c0_i32_98, %c1_i32_99] : memref<2x8x!tpu.dma_semaphore, #tpu.memory_space<semaphore_mem>> -> memref<1x1x!tpu.dma_semaphore, #tpu.memory_space<semaphore_mem>>
    %124 = tpu.memref_squeeze %123 : memref<1x1x!tpu.dma_semaphore, #tpu.memory_space<semaphore_mem>> -> memref<!tpu.dma_semaphore, #tpu.memory_space<semaphore_mem>>
    tpu.wait_dma2 semaphore(%124 : memref<!tpu.dma_semaphore, #tpu.memory_space<semaphore_mem>>) src(%121 : memref<1x16xf32, #tpu.memory_space<any>>) dst(%122 : memref<1x16xf32, #tpu.memory_space<vmem>>)
    %c1_i32_103 = arith.constant 1 : i32
    %c1_i32_104 = arith.constant 1 : i32
    %c0_i32_105 = arith.constant 0 : i32
    %125 = tpu.memref_slice %arg4[%20, %c0_i32_105] : memref<12x16xf32, #tpu.memory_space<any>> -> memref<1x16xf32, #tpu.memory_space<any>>
    %c1_i32_106 = arith.constant 1 : i32
    %c0_i32_107 = arith.constant 0 : i32
    %126 = tpu.memref_slice %arg12[%c1_i32_106, %c0_i32_107] : memref<8x16xf32, #tpu.memory_space<vmem>> -> memref<1x16xf32, #tpu.memory_space<vmem>>
    %127 = tpu.memref_slice %arg13[%c1_i32_103, %c1_i32_104] : memref<2x8x!tpu.dma_semaphore, #tpu.memory_space<semaphore_mem>> -> memref<1x1x!tpu.dma_semaphore, #tpu.memory_space<semaphore_mem>>
    %128 = tpu.memref_squeeze %127 : memref<1x1x!tpu.dma_semaphore, #tpu.memory_space<semaphore_mem>> -> memref<!tpu.dma_semaphore, #tpu.memory_space<semaphore_mem>>
    tpu.wait_dma2 semaphore(%128 : memref<!tpu.dma_semaphore, #tpu.memory_space<semaphore_mem>>) src(%125 : memref<1x16xf32, #tpu.memory_space<any>>) dst(%126 : memref<1x16xf32, #tpu.memory_space<vmem>>)
    %c0_i32_108 = arith.constant 0 : i32
    %c2_i32_109 = arith.constant 2 : i32
    %c0_i32_110 = arith.constant 0 : i32
    %129 = tpu.memref_slice %arg3[%31, %c0_i32_110] : memref<10x16xf32, #tpu.memory_space<any>> -> memref<1x16xf32, #tpu.memory_space<any>>
    %c2_i32_111 = arith.constant 2 : i32
    %c0_i32_112 = arith.constant 0 : i32
    %130 = tpu.memref_slice %arg11[%c2_i32_111, %c0_i32_112] : memref<8x16xf32, #tpu.memory_space<vmem>> -> memref<1x16xf32, #tpu.memory_space<vmem>>
    %131 = tpu.memref_slice %arg13[%c0_i32_108, %c2_i32_109] : memref<2x8x!tpu.dma_semaphore, #tpu.memory_space<semaphore_mem>> -> memref<1x1x!tpu.dma_semaphore, #tpu.memory_space<semaphore_mem>>
    %132 = tpu.memref_squeeze %131 : memref<1x1x!tpu.dma_semaphore, #tpu.memory_space<semaphore_mem>> -> memref<!tpu.dma_semaphore, #tpu.memory_space<semaphore_mem>>
    tpu.wait_dma2 semaphore(%132 : memref<!tpu.dma_semaphore, #tpu.memory_space<semaphore_mem>>) src(%129 : memref<1x16xf32, #tpu.memory_space<any>>) dst(%130 : memref<1x16xf32, #tpu.memory_space<vmem>>)
    %c1_i32_113 = arith.constant 1 : i32
    %c2_i32_114 = arith.constant 2 : i32
    %c0_i32_115 = arith.constant 0 : i32
    %133 = tpu.memref_slice %arg4[%34, %c0_i32_115] : memref<12x16xf32, #tpu.memory_space<any>> -> memref<1x16xf32, #tpu.memory_space<any>>
    %c2_i32_116 = arith.constant 2 : i32
    %c0_i32_117 = arith.constant 0 : i32
    %134 = tpu.memref_slice %arg12[%c2_i32_116, %c0_i32_117] : memref<8x16xf32, #tpu.memory_space<vmem>> -> memref<1x16xf32, #tpu.memory_space<vmem>>
    %135 = tpu.memref_slice %arg13[%c1_i32_113, %c2_i32_114] : memref<2x8x!tpu.dma_semaphore, #tpu.memory_space<semaphore_mem>> -> memref<1x1x!tpu.dma_semaphore, #tpu.memory_space<semaphore_mem>>
    %136 = tpu.memref_squeeze %135 : memref<1x1x!tpu.dma_semaphore, #tpu.memory_space<semaphore_mem>> -> memref<!tpu.dma_semaphore, #tpu.memory_space<semaphore_mem>>
    tpu.wait_dma2 semaphore(%136 : memref<!tpu.dma_semaphore, #tpu.memory_space<semaphore_mem>>) src(%133 : memref<1x16xf32, #tpu.memory_space<any>>) dst(%134 : memref<1x16xf32, #tpu.memory_space<vmem>>)
    %c0_i32_118 = arith.constant 0 : i32
    %c3_i32_119 = arith.constant 3 : i32
    %c0_i32_120 = arith.constant 0 : i32
    %137 = tpu.memref_slice %arg3[%45, %c0_i32_120] : memref<10x16xf32, #tpu.memory_space<any>> -> memref<1x16xf32, #tpu.memory_space<any>>
    %c3_i32_121 = arith.constant 3 : i32
    %c0_i32_122 = arith.constant 0 : i32
    %138 = tpu.memref_slice %arg11[%c3_i32_121, %c0_i32_122] : memref<8x16xf32, #tpu.memory_space<vmem>> -> memref<1x16xf32, #tpu.memory_space<vmem>>
    %139 = tpu.memref_slice %arg13[%c0_i32_118, %c3_i32_119] : memref<2x8x!tpu.dma_semaphore, #tpu.memory_space<semaphore_mem>> -> memref<1x1x!tpu.dma_semaphore, #tpu.memory_space<semaphore_mem>>
    %140 = tpu.memref_squeeze %139 : memref<1x1x!tpu.dma_semaphore, #tpu.memory_space<semaphore_mem>> -> memref<!tpu.dma_semaphore, #tpu.memory_space<semaphore_mem>>
    tpu.wait_dma2 semaphore(%140 : memref<!tpu.dma_semaphore, #tpu.memory_space<semaphore_mem>>) src(%137 : memref<1x16xf32, #tpu.memory_space<any>>) dst(%138 : memref<1x16xf32, #tpu.memory_space<vmem>>)
    %c1_i32_123 = arith.constant 1 : i32
    %c3_i32_124 = arith.constant 3 : i32
    %c0_i32_125 = arith.constant 0 : i32
    %141 = tpu.memref_slice %arg4[%48, %c0_i32_125] : memref<12x16xf32, #tpu.memory_space<any>> -> memref<1x16xf32, #tpu.memory_space<any>>
    %c3_i32_126 = arith.constant 3 : i32
    %c0_i32_127 = arith.constant 0 : i32
    %142 = tpu.memref_slice %arg12[%c3_i32_126, %c0_i32_127] : memref<8x16xf32, #tpu.memory_space<vmem>> -> memref<1x16xf32, #tpu.memory_space<vmem>>
    %143 = tpu.memref_slice %arg13[%c1_i32_123, %c3_i32_124] : memref<2x8x!tpu.dma_semaphore, #tpu.memory_space<semaphore_mem>> -> memref<1x1x!tpu.dma_semaphore, #tpu.memory_space<semaphore_mem>>
    %144 = tpu.memref_squeeze %143 : memref<1x1x!tpu.dma_semaphore, #tpu.memory_space<semaphore_mem>> -> memref<!tpu.dma_semaphore, #tpu.memory_space<semaphore_mem>>
    tpu.wait_dma2 semaphore(%144 : memref<!tpu.dma_semaphore, #tpu.memory_space<semaphore_mem>>) src(%141 : memref<1x16xf32, #tpu.memory_space<any>>) dst(%142 : memref<1x16xf32, #tpu.memory_space<vmem>>)
    %c0_i32_128 = arith.constant 0 : i32
    %c4_i32_129 = arith.constant 4 : i32
    %c0_i32_130 = arith.constant 0 : i32
    %145 = tpu.memref_slice %arg3[%59, %c0_i32_130] : memref<10x16xf32, #tpu.memory_space<any>> -> memref<1x16xf32, #tpu.memory_space<any>>
    %c4_i32_131 = arith.constant 4 : i32
    %c0_i32_132 = arith.constant 0 : i32
    %146 = tpu.memref_slice %arg11[%c4_i32_131, %c0_i32_132] : memref<8x16xf32, #tpu.memory_space<vmem>> -> memref<1x16xf32, #tpu.memory_space<vmem>>
    %147 = tpu.memref_slice %arg13[%c0_i32_128, %c4_i32_129] : memref<2x8x!tpu.dma_semaphore, #tpu.memory_space<semaphore_mem>> -> memref<1x1x!tpu.dma_semaphore, #tpu.memory_space<semaphore_mem>>
    %148 = tpu.memref_squeeze %147 : memref<1x1x!tpu.dma_semaphore, #tpu.memory_space<semaphore_mem>> -> memref<!tpu.dma_semaphore, #tpu.memory_space<semaphore_mem>>
    tpu.wait_dma2 semaphore(%148 : memref<!tpu.dma_semaphore, #tpu.memory_space<semaphore_mem>>) src(%145 : memref<1x16xf32, #tpu.memory_space<any>>) dst(%146 : memref<1x16xf32, #tpu.memory_space<vmem>>)
    %c1_i32_133 = arith.constant 1 : i32
    %c4_i32_134 = arith.constant 4 : i32
    %c0_i32_135 = arith.constant 0 : i32
    %149 = tpu.memref_slice %arg4[%62, %c0_i32_135] : memref<12x16xf32, #tpu.memory_space<any>> -> memref<1x16xf32, #tpu.memory_space<any>>
    %c4_i32_136 = arith.constant 4 : i32
    %c0_i32_137 = arith.constant 0 : i32
    %150 = tpu.memref_slice %arg12[%c4_i32_136, %c0_i32_137] : memref<8x16xf32, #tpu.memory_space<vmem>> -> memref<1x16xf32, #tpu.memory_space<vmem>>
    %151 = tpu.memref_slice %arg13[%c1_i32_133, %c4_i32_134] : memref<2x8x!tpu.dma_semaphore, #tpu.memory_space<semaphore_mem>> -> memref<1x1x!tpu.dma_semaphore, #tpu.memory_space<semaphore_mem>>
    %152 = tpu.memref_squeeze %151 : memref<1x1x!tpu.dma_semaphore, #tpu.memory_space<semaphore_mem>> -> memref<!tpu.dma_semaphore, #tpu.memory_space<semaphore_mem>>
    tpu.wait_dma2 semaphore(%152 : memref<!tpu.dma_semaphore, #tpu.memory_space<semaphore_mem>>) src(%149 : memref<1x16xf32, #tpu.memory_space<any>>) dst(%150 : memref<1x16xf32, #tpu.memory_space<vmem>>)
    %c0_i32_138 = arith.constant 0 : i32
    %c5_i32_139 = arith.constant 5 : i32
    %c0_i32_140 = arith.constant 0 : i32
    %153 = tpu.memref_slice %arg3[%73, %c0_i32_140] : memref<10x16xf32, #tpu.memory_space<any>> -> memref<1x16xf32, #tpu.memory_space<any>>
    %c5_i32_141 = arith.constant 5 : i32
    %c0_i32_142 = arith.constant 0 : i32
    %154 = tpu.memref_slice %arg11[%c5_i32_141, %c0_i32_142] : memref<8x16xf32, #tpu.memory_space<vmem>> -> memref<1x16xf32, #tpu.memory_space<vmem>>
    %155 = tpu.memref_slice %arg13[%c0_i32_138, %c5_i32_139] : memref<2x8x!tpu.dma_semaphore, #tpu.memory_space<semaphore_mem>> -> memref<1x1x!tpu.dma_semaphore, #tpu.memory_space<semaphore_mem>>
    %156 = tpu.memref_squeeze %155 : memref<1x1x!tpu.dma_semaphore, #tpu.memory_space<semaphore_mem>> -> memref<!tpu.dma_semaphore, #tpu.memory_space<semaphore_mem>>
    tpu.wait_dma2 semaphore(%156 : memref<!tpu.dma_semaphore, #tpu.memory_space<semaphore_mem>>) src(%153 : memref<1x16xf32, #tpu.memory_space<any>>) dst(%154 : memref<1x16xf32, #tpu.memory_space<vmem>>)
    %c1_i32_143 = arith.constant 1 : i32
    %c5_i32_144 = arith.constant 5 : i32
    %c0_i32_145 = arith.constant 0 : i32
    %157 = tpu.memref_slice %arg4[%76, %c0_i32_145] : memref<12x16xf32, #tpu.memory_space<any>> -> memref<1x16xf32, #tpu.memory_space<any>>
    %c5_i32_146 = arith.constant 5 : i32
    %c0_i32_147 = arith.constant 0 : i32
    %158 = tpu.memref_slice %arg12[%c5_i32_146, %c0_i32_147] : memref<8x16xf32, #tpu.memory_space<vmem>> -> memref<1x16xf32, #tpu.memory_space<vmem>>
    %159 = tpu.memref_slice %arg13[%c1_i32_143, %c5_i32_144] : memref<2x8x!tpu.dma_semaphore, #tpu.memory_space<semaphore_mem>> -> memref<1x1x!tpu.dma_semaphore, #tpu.memory_space<semaphore_mem>>
    %160 = tpu.memref_squeeze %159 : memref<1x1x!tpu.dma_semaphore, #tpu.memory_space<semaphore_mem>> -> memref<!tpu.dma_semaphore, #tpu.memory_space<semaphore_mem>>
    tpu.wait_dma2 semaphore(%160 : memref<!tpu.dma_semaphore, #tpu.memory_space<semaphore_mem>>) src(%157 : memref<1x16xf32, #tpu.memory_space<any>>) dst(%158 : memref<1x16xf32, #tpu.memory_space<vmem>>)
    %c0_i32_148 = arith.constant 0 : i32
    %c6_i32_149 = arith.constant 6 : i32
    %c0_i32_150 = arith.constant 0 : i32
    %161 = tpu.memref_slice %arg3[%87, %c0_i32_150] : memref<10x16xf32, #tpu.memory_space<any>> -> memref<1x16xf32, #tpu.memory_space<any>>
    %c6_i32_151 = arith.constant 6 : i32
    %c0_i32_152 = arith.constant 0 : i32
    %162 = tpu.memref_slice %arg11[%c6_i32_151, %c0_i32_152] : memref<8x16xf32, #tpu.memory_space<vmem>> -> memref<1x16xf32, #tpu.memory_space<vmem>>
    %163 = tpu.memref_slice %arg13[%c0_i32_148, %c6_i32_149] : memref<2x8x!tpu.dma_semaphore, #tpu.memory_space<semaphore_mem>> -> memref<1x1x!tpu.dma_semaphore, #tpu.memory_space<semaphore_mem>>
    %164 = tpu.memref_squeeze %163 : memref<1x1x!tpu.dma_semaphore, #tpu.memory_space<semaphore_mem>> -> memref<!tpu.dma_semaphore, #tpu.memory_space<semaphore_mem>>
    tpu.wait_dma2 semaphore(%164 : memref<!tpu.dma_semaphore, #tpu.memory_space<semaphore_mem>>) src(%161 : memref<1x16xf32, #tpu.memory_space<any>>) dst(%162 : memref<1x16xf32, #tpu.memory_space<vmem>>)
    %c1_i32_153 = arith.constant 1 : i32
    %c6_i32_154 = arith.constant 6 : i32
    %c0_i32_155 = arith.constant 0 : i32
    %165 = tpu.memref_slice %arg4[%90, %c0_i32_155] : memref<12x16xf32, #tpu.memory_space<any>> -> memref<1x16xf32, #tpu.memory_space<any>>
    %c6_i32_156 = arith.constant 6 : i32
    %c0_i32_157 = arith.constant 0 : i32
    %166 = tpu.memref_slice %arg12[%c6_i32_156, %c0_i32_157] : memref<8x16xf32, #tpu.memory_space<vmem>> -> memref<1x16xf32, #tpu.memory_space<vmem>>
    %167 = tpu.memref_slice %arg13[%c1_i32_153, %c6_i32_154] : memref<2x8x!tpu.dma_semaphore, #tpu.memory_space<semaphore_mem>> -> memref<1x1x!tpu.dma_semaphore, #tpu.memory_space<semaphore_mem>>
    %168 = tpu.memref_squeeze %167 : memref<1x1x!tpu.dma_semaphore, #tpu.memory_space<semaphore_mem>> -> memref<!tpu.dma_semaphore, #tpu.memory_space<semaphore_mem>>
    tpu.wait_dma2 semaphore(%168 : memref<!tpu.dma_semaphore, #tpu.memory_space<semaphore_mem>>) src(%165 : memref<1x16xf32, #tpu.memory_space<any>>) dst(%166 : memref<1x16xf32, #tpu.memory_space<vmem>>)
    %c0_i32_158 = arith.constant 0 : i32
    %c7_i32_159 = arith.constant 7 : i32
    %c0_i32_160 = arith.constant 0 : i32
    %169 = tpu.memref_slice %arg3[%101, %c0_i32_160] : memref<10x16xf32, #tpu.memory_space<any>> -> memref<1x16xf32, #tpu.memory_space<any>>
    %c7_i32_161 = arith.constant 7 : i32
    %c0_i32_162 = arith.constant 0 : i32
    %170 = tpu.memref_slice %arg11[%c7_i32_161, %c0_i32_162] : memref<8x16xf32, #tpu.memory_space<vmem>> -> memref<1x16xf32, #tpu.memory_space<vmem>>
    %171 = tpu.memref_slice %arg13[%c0_i32_158, %c7_i32_159] : memref<2x8x!tpu.dma_semaphore, #tpu.memory_space<semaphore_mem>> -> memref<1x1x!tpu.dma_semaphore, #tpu.memory_space<semaphore_mem>>
    %172 = tpu.memref_squeeze %171 : memref<1x1x!tpu.dma_semaphore, #tpu.memory_space<semaphore_mem>> -> memref<!tpu.dma_semaphore, #tpu.memory_space<semaphore_mem>>
    tpu.wait_dma2 semaphore(%172 : memref<!tpu.dma_semaphore, #tpu.memory_space<semaphore_mem>>) src(%169 : memref<1x16xf32, #tpu.memory_space<any>>) dst(%170 : memref<1x16xf32, #tpu.memory_space<vmem>>)
    %c1_i32_163 = arith.constant 1 : i32
    %c7_i32_164 = arith.constant 7 : i32
    %c0_i32_165 = arith.constant 0 : i32
    %173 = tpu.memref_slice %arg4[%104, %c0_i32_165] : memref<12x16xf32, #tpu.memory_space<any>> -> memref<1x16xf32, #tpu.memory_space<any>>
    %c7_i32_166 = arith.constant 7 : i32
    %c0_i32_167 = arith.constant 0 : i32
    %174 = tpu.memref_slice %arg12[%c7_i32_166, %c0_i32_167] : memref<8x16xf32, #tpu.memory_space<vmem>> -> memref<1x16xf32, #tpu.memory_space<vmem>>
    %175 = tpu.memref_slice %arg13[%c1_i32_163, %c7_i32_164] : memref<2x8x!tpu.dma_semaphore, #tpu.memory_space<semaphore_mem>> -> memref<1x1x!tpu.dma_semaphore, #tpu.memory_space<semaphore_mem>>
    %176 = tpu.memref_squeeze %175 : memref<1x1x!tpu.dma_semaphore, #tpu.memory_space<semaphore_mem>> -> memref<!tpu.dma_semaphore, #tpu.memory_space<semaphore_mem>>
    tpu.wait_dma2 semaphore(%176 : memref<!tpu.dma_semaphore, #tpu.memory_space<semaphore_mem>>) src(%173 : memref<1x16xf32, #tpu.memory_space<any>>) dst(%174 : memref<1x16xf32, #tpu.memory_space<vmem>>)
    %c0 = arith.constant 0 : index
    %c0_168 = arith.constant 0 : index
    %177 = vector.load %arg11[%c0, %c0_168] : memref<8x16xf32, #tpu.memory_space<vmem>>, vector<8x16xf32>
    %c0_169 = arith.constant 0 : index
    %c0_170 = arith.constant 0 : index
    %178 = vector.load %arg12[%c0_169, %c0_170] : memref<8x16xf32, #tpu.memory_space<vmem>>, vector<8x16xf32>
    %c0_171 = arith.constant 0 : index
    %c0_172 = arith.constant 0 : index
    %179 = vector.load %arg5[%c0_171, %c0_172] : memref<16x1024xf32, #tpu.memory_space<vmem>>, vector<16x1024xf32>
    %cst = arith.constant dense<0.000000e+00> : vector<8x1024xf32>
    %180 = tpu.matmul %177, %179, %cst {dimension_numbers = #tpu.dot_dimension_numbers<[1], [0], [0], [1], [0, 0, 1, 1], [], []>, precision = #tpu.contract_precision<fp32>} : vector<8x16xf32>, vector<16x1024xf32>, vector<8x1024xf32> -> vector<8x1024xf32>
    %c0_173 = arith.constant 0 : index
    %c0_174 = arith.constant 0 : index
    %181 = vector.load %arg6[%c0_173, %c0_174] : memref<16x1024xf32, #tpu.memory_space<vmem>>, vector<16x1024xf32>
    %cst_175 = arith.constant dense<0.000000e+00> : vector<8x1024xf32>
    %182 = tpu.matmul %178, %181, %cst_175 {dimension_numbers = #tpu.dot_dimension_numbers<[1], [0], [0], [1], [0, 0, 1, 1], [], []>, precision = #tpu.contract_precision<fp32>} : vector<8x16xf32>, vector<16x1024xf32>, vector<8x1024xf32> -> vector<8x1024xf32>
    %183 = arith.addf %180, %182 : vector<8x1024xf32>
    %c0_176 = arith.constant 0 : index
    %c0_177 = arith.constant 0 : index
    %184 = vector.load %arg7[%c0_176, %c0_177] : memref<1x1024xf32, #tpu.memory_space<vmem>>, vector<1x1024xf32>
    %185 = vector.broadcast %184 : vector<1x1024xf32> to vector<8x1024xf32>
    %186 = arith.addf %183, %185 : vector<8x1024xf32>
    %cst_178 = arith.constant 0.000000e+00 : f32
    %187 = vector.broadcast %cst_178 : f32 to vector<8x1024xf32>
    %188 = arith.maximumf %186, %187 : vector<8x1024xf32>
    %c0_179 = arith.constant 0 : index
    %c0_180 = arith.constant 0 : index
    %189 = vector.load %arg8[%c0_179, %c0_180] : memref<1x1024xf32, #tpu.memory_space<vmem>>, vector<1x1024xf32>
    %190 = vector.broadcast %189 : vector<1x1024xf32> to vector<8x1024xf32>
    %191 = arith.mulf %188, %190 : vector<8x1024xf32>
    %cst_181 = arith.constant dense<0.000000e+00> : vector<8xf32>
    %192 = vector.multi_reduction <add>, %191, %cst_181 [1] : vector<8x1024xf32> to vector<8xf32>
    %193 = vector.shape_cast %192 : vector<8xf32> to vector<1x1x8xf32>
    %c0_182 = arith.constant 0 : index
    %c0_183 = arith.constant 0 : index
    %194 = memref.load %arg9[%c0_182, %c0_183] : memref<1x1xf32, #tpu.memory_space<smem>>
    %195 = vector.broadcast %194 : f32 to vector<1x1x8xf32>
    %196 = arith.addf %193, %195 : vector<1x1x8xf32>
    %c0_184 = arith.constant 0 : index
    %c0_185 = arith.constant 0 : index
    %c0_186 = arith.constant 0 : index
    %197 = vector.load %arg10[%c0_184, %c0_185, %c0_186] : memref<1x1x8xf32, #tpu.memory_space<vmem>>, vector<1x1x8xf32>
    tpu.vector_store %arg10[%c0_184, %c0_185, %c0_186], %196 {strides = array<i32>} : memref<1x1x8xf32, #tpu.memory_space<vmem>>, vector<1x1x8xf32>,
    return
  }
  func.func @transform_2(%arg0: i32, %arg1: memref<32xi32, #tpu.memory_space<smem>>, %arg2: memref<32xi32, #tpu.memory_space<smem>>) -> (i32, i32) {
    %c0_i32 = arith.constant 0 : i32
    %c0_i32_0 = arith.constant 0 : i32
    %c0_i32_1 = arith.constant 0 : i32
    return %c0_i32, %c0_i32_0 : i32, i32
  }
  func.func @transform_3(%arg0: i32, %arg1: memref<32xi32, #tpu.memory_space<smem>>, %arg2: memref<32xi32, #tpu.memory_space<smem>>) -> (i32, i32) {
    %c0_i32 = arith.constant 0 : i32
    %c0_i32_0 = arith.constant 0 : i32
    %c0_i32_1 = arith.constant 0 : i32
    return %c0_i32, %c0_i32_0 : i32, i32
  }
  func.func @transform_4(%arg0: i32, %arg1: memref<32xi32, #tpu.memory_space<smem>>, %arg2: memref<32xi32, #tpu.memory_space<smem>>) -> (i32, i32) {
    %c0_i32 = arith.constant 0 : i32
    %c0_i32_0 = arith.constant 0 : i32
    %c0_i32_1 = arith.constant 0 : i32
    return %c0_i32, %c0_i32_0 : i32, i32
  }
  func.func @transform_5(%arg0: i32, %arg1: memref<32xi32, #tpu.memory_space<smem>>, %arg2: memref<32xi32, #tpu.memory_space<smem>>) -> (i32, i32) {
    %c0_i32 = arith.constant 0 : i32
    %c0_i32_0 = arith.constant 0 : i32
    %c0_i32_1 = arith.constant 0 : i32
    return %c0_i32, %c0_i32_0 : i32, i32
  }
  func.func @transform_6(%arg0: i32, %arg1: memref<32xi32, #tpu.memory_space<smem>>, %arg2: memref<32xi32, #tpu.memory_space<smem>>) -> (i32, i32) {
    %c0_i32 = arith.constant 0 : i32
    %c0_i32_0 = arith.constant 0 : i32
    %c0_i32_1 = arith.constant 0 : i32
    return %c0_i32, %c0_i32_0 : i32, i32
  }
  func.func @transform_7(%arg0: i32, %arg1: memref<32xi32, #tpu.memory_space<smem>>, %arg2: memref<32xi32, #tpu.memory_space<smem>>) -> (i32, i32, i32) {
    %c0_i32 = arith.constant 0 : i32
    %c0_i32_0 = arith.constant 0 : i32
    %c0_i32_1 = arith.constant 0 : i32
    return %arg0, %c0_i32, %c0_i32_0 : i32, i32, i32
  }
}

</mosaic_0001>

<bundles_post_ra>
// kernel: tile.9
= control target key start
LH: loop header
LB: loop body
LE: loop exit
PB: predicated region body
PF: predicated region fallthrough
CT: control target
= control target key end

     0   :  { %vm3_vm0 = vcmask 523264   ;;  %vm10_vm1 = vcmask 1048064   ;;  %s111_s0 = inlined_call_operand.vmem [shape: f32[16,64], index: 0, kind: input, shape index: {}]   ;;  %s112_s1 = inlined_call_operand.vmem [shape: f32[1,1024], index: 1, kind: output, shape index: {}]  }
   0x1   :  { %v61_v0 = vld [vmem:[%s111_s0 + $0x1] ss:$2 sm:$0xff]   ;;  %v2_v1 = vld [vmem:[%s111_s0] ss:$2 sm:$0xff]   ;;  %s70_s0 = smov 64  }
   0x2   :  { %8 = vrot.lane.b32.xlu0 %v61_v0, %s70_s0  ;;  %4 = vst.msk [vmem:[#allocation0] ss:$8 sm:$0xf] %vm3_vm0, %v2_v1  }
   0x3   :  { %5 = vst.msk [vmem:[#allocation0] ss:$8 sm:$0xf0] %vm3_vm0, %v2_v1  }
  0x74   :  { %v9_v2 = vpop.permute.xlu0 %8  }
  0x75   :  { %11 = vst.msk [vmem:[#allocation0] ss:$8 sm:$0xf] %vm10_vm1, %v9_v2  }
  0x76   :  { %12 = vst.msk [vmem:[#allocation0] ss:$8 sm:$0xf0] %vm10_vm1, %v9_v2  }
  0x7c   :  { %v15_v3 = vld [vmem:[#allocation0] sm:$0x1]  ;;  %v20_v4 = vld [vmem:[#allocation0 + $0x8] sm:$0x1]  ;;  %v26_v5 = vld [vmem:[#allocation0 + $0x10] sm:$0x1] }
  0x7d   :  { %18 = vst [vmem:[%s112_s1] sm:$0x1] %v15_v3  ;;  %v32_v6 = vld [vmem:[#allocation0 + $0x18] sm:$0x1]  ;;  %v38_v7 = vld [vmem:[#allocation0 + $0x20] sm:$0x1] }
  0x7e   :  { %62 = vst [vmem:[%s112_s1 + $0x1] sm:$0x1] %v20_v4  ;;  %v44_v8 = vld [vmem:[#allocation0 + $0x28] sm:$0x1]  ;;  %v50_v9 = vld [vmem:[#allocation0 + $0x30] sm:$0x1] }
  0x7f   :  { %63 = vst [vmem:[%s112_s1 + $0x2] sm:$0x1] %v26_v5  ;;  %v56_v10 = vld [vmem:[#allocation0 + $0x38] sm:$0x1] }
  0x80   :  { %64 = vst [vmem:[%s112_s1 + $0x3] sm:$0x1] %v32_v6 }
  0x81   :  { %65 = vst [vmem:[%s112_s1 + $0x4] sm:$0x1] %v38_v7 }
  0x82   :  { %66 = vst [vmem:[%s112_s1 + $0x5] sm:$0x1] %v44_v8 }
  0x83   :  { %67 = vst [vmem:[%s112_s1 + $0x6] sm:$0x1] %v50_v9 }
  0x84   :  { %68 = vst [vmem:[%s112_s1 + $0x7] sm:$0x1] %v56_v10 }

// kernel: uinet_pallas_forward.1
= control target key start
LH: loop header
LB: loop body
LE: loop exit
PB: predicated region body
PF: predicated region fallthrough
CT: control target
= control target key end

     0   :  { %s3854_s15 = smov [#allocation6]   ;;  %s3855_s16 = smov [#allocation7]   ;;  %s4543_s0 = inlined_call_operand.vmem [shape: s32[32], index: 0, kind: input, shape index: {}]   ;;  %s4544_s2 = inlined_call_operand.vmem [shape: f32[10,16], index: 2, kind: input, shape index: {}]   ;;  %s4545_s3 = inlined_call_operand.vmem [shape: f32[12,16], index: 3, kind: input, shape index: {}]   ;;  %s4546_s4 = inlined_call_operand.vmem [shape: f32[16,1024], index: 4, kind: input, shape index: {}]   ;;  %s4547_s5 = inlined_call_operand.vmem [shape: f32[16,1024], index: 5, kind: input, shape index: {}]   ;;  %s4548_s6 = inlined_call_operand.vmem [shape: f32[1,1024], index: 6, kind: input, shape index: {}]   ;;  %s4549_s7 = inlined_call_operand.vmem [shape: f32[1,1024], index: 7, kind: input, shape index: {}]   ;;  %s4550_s9 = inlined_call_operand.vmem [shape: f32[4,1,8], index: 9, kind: output, shape index: {}]   ;;  %s4551_s1 = inlined_call_operand.vmem [shape: s32[32], index: 1, kind: input, shape index: {}]   ;;  %s4552_s8 = inlined_call_operand.<no memory space> [shape: f32[1,1], index: 8, kind: input, shape index: {}]  }
   0x1   :  { %s15_s11 = sshll.u32 %s4543_s0, 4  ;;  %s20_s14 = sshll.u32 %s4551_s1, 4  ;;  %s16_s11 = int_to_ptr.vmem [resolvable:$true] %s15_s11  ;;  %s21_s14 = int_to_ptr.vmem [resolvable:$true] %s20_s14 }
   0x2   :  { %18 = dma.vmem_to_smem %s16_s11, 16, %s3854_s15, [#allocation5] }
   0x3   :  { %23 = dma.vmem_to_smem %s21_s14, 16, %s3855_s16, [#allocation5] }
   0x4   :  { %24 = sst [smem:[#allocation8]] %s4552_s8 }
   0x5   :  { %3816 = dma.done.wait [#allocation5], 32 }
   0x6   :  { %3817 = vsyncadd [#allocation5], 4294967264 }
   0x7   :  { %27 = sfence }
   0x8   :  { %s3915_s19 = smov 0  }
   0x9 LB: > { %s3755_s0 = sadd.s32 4294967295, %s3852_s19   ;;  %p3758_p0 = scmp.ge.s32.totalorder %s3852_s19, 1  ;;  %s3852_s19 = sphi %s3915_s19, %s33_s19  }
   0xa   : > { %p195_p1 = scmp.lt.s32.totalorder %s3852_s19, 5 }
   0xc   : > { %p196_p2 = pnand %p3758_p0, %p195_p1 }
   0xd   : > { %p216_p3 = scmp.lt.s32.totalorder (!%p196_p2), %s3755_s0, 3  ;;  %s3923_s1 = sshll.u32 (!%p196_p2), %s3755_s0, 3 }
   0xe   : > { %199 = sbr.rel (%p196_p2) target bundleno = 608 (0x260), region = 40  ;;  %s220_s8 = sld [smem:[#allocation6 + %s3923_s1]] (!%p196_p2) }
   0xf   : > { %s221_s20 = sld [smem:[#allocation7 + %s3923_s1]] (!%p196_p2) }
  0x13   : > { %s4554_s0 = smov (!%p216_p3, %s3755_s0), 3 }
  0x14   : > { %s218_s23 = scalar_lea.vmem %s4550_s9, %s4554_s0  ;;  %s222_s26 = scalar_lea.vmem %s4544_s2, %s220_s8 }
  0x15   : > { %v237_v0 = vld [vmem:[%s222_s26] sm:$0x1] }
  0x16   : > { %238 = vst [vmem:[#allocation2] sm:$0x1] %v237_v0 }
  0x17   : > { %256 = vsyncadd [#allocation4], 16  ;;  %s257_s29 = scalar_lea.vmem %s4545_s3, %s221_s20 }
  0x18   : > { %v273_v1 = vld [vmem:[%s257_s29] sm:$0x1] }
  0x19   : > { %274 = vst [vmem:[#allocation3] sm:$0x1] %v273_v1 }
  0x1a   : > { %292 = vsyncadd [#allocation4 + $0x8], 16  ;;  %s293_s30 = sadd.s32 1, %s3923_s1 }
  0x1b   : > { %s294_s10 = sld [smem:[#allocation6 + %s293_s30]] }
  0x1c   : > { %s295_s11 = sld [smem:[#allocation7 + %s293_s30]] }
  0x21   : > { %s296_s14 = scalar_lea.vmem %s4544_s2, %s294_s10 }
  0x22   : > { %v313_v2 = vld [vmem:[%s296_s14] sm:$0x1] }
  0x23   : > { %314 = vst [vmem:[#allocation2 + $0x1] sm:$0x1] %v313_v2 }
  0x24   : > { %332 = vsyncadd [#allocation4 + $0x1], 16  ;;  %s333_s17 = scalar_lea.vmem %s4545_s3, %s295_s11 }
  0x25   : > { %v350_v3 = vld [vmem:[%s333_s17] sm:$0x1] }
  0x26   : > { %351 = vst [vmem:[#allocation3 + $0x1] sm:$0x1] %v350_v3 }
  0x27   : > { %369 = vsyncadd [#allocation4 + $0x9], 16  ;;  %s370_s18 = sadd.s32 2, %s3923_s1 }
  0x28   : > { %s371_s8 = sld [smem:[#allocation6 + %s370_s18]] }
  0x29   : > { %s372_s20 = sld [smem:[#allocation7 + %s370_s18]] }
  0x2e   : > { %s373_s24 = scalar_lea.vmem %s4544_s2, %s371_s8 }
  0x2f   : > { %v390_v4 = vld [vmem:[%s373_s24] sm:$0x1] }
  0x30   : > { %391 = vst [vmem:[#allocation2 + $0x2] sm:$0x1] %v390_v4 }
  0x31   : > { %409 = vsyncadd [#allocation4 + $0x2], 16  ;;  %s410_s27 = scalar_lea.vmem %s4545_s3, %s372_s20 }
  0x32   : > { %v427_v5 = vld [vmem:[%s410_s27] sm:$0x1] }
  0x33   : > { %428 = vst [vmem:[#allocation3 + $0x2] sm:$0x1] %v427_v5 }
  0x34   : > { %446 = vsyncadd [#allocation4 + $0xa], 16  ;;  %s447_s28 = sadd.s32 3, %s3923_s1 }
  0x35   : > { %s448_s29 = sld [smem:[#allocation6 + %s447_s28]] }
  0x36   : > { %s449_s30 = sld [smem:[#allocation7 + %s447_s28]] }
  0x3b   : > { %s450_s12 = scalar_lea.vmem %s4544_s2, %s448_s29 }
  0x3c   : > { %v467_v6 = vld [vmem:[%s450_s12] sm:$0x1] }
  0x3d   : > { %468 = vst [vmem:[#allocation2 + $0x3] sm:$0x1] %v467_v6 }
  0x3e   : > { %486 = vsyncadd [#allocation4 + $0x3], 16  ;;  %s487_s15 = scalar_lea.vmem %s4545_s3, %s449_s30 }
  0x3f   : > { %v504_v7 = vld [vmem:[%s487_s15] sm:$0x1] }
  0x40   : > { %505 = vst [vmem:[#allocation3 + $0x3] sm:$0x1] %v504_v7 }
  0x41   : > { %523 = vsyncadd [#allocation4 + $0xb], 16  ;;  %s524_s16 = sadd.s32 4, %s3923_s1 }
  0x42   : > { %s525_s17 = sld [smem:[#allocation6 + %s524_s16]] }
  0x43   : > { %s526_s18 = sld [smem:[#allocation7 + %s524_s16]] }
  0x48   : > { %s527_s21 = scalar_lea.vmem %s4544_s2, %s525_s17 }
  0x49   : > { %v544_v8 = vld [vmem:[%s527_s21] sm:$0x1] }
  0x4a   : > { %545 = vst [vmem:[#allocation2 + $0x4] sm:$0x1] %v544_v8 }
  0x4b   : > { %563 = vsyncadd [#allocation4 + $0x4], 16  ;;  %s564_s25 = scalar_lea.vmem %s4545_s3, %s526_s18 }
  0x4c   : > { %v581_v9 = vld [vmem:[%s564_s25] sm:$0x1] }
  0x4d   : > { %582 = vst [vmem:[#allocation3 + $0x4] sm:$0x1] %v581_v9 }
  0x4e   : > { %600 = vsyncadd [#allocation4 + $0xc], 16  ;;  %s601_s26 = sadd.s32 5, %s3923_s1 }
  0x4f   : > { %s602_s27 = sld [smem:[#allocation6 + %s601_s26]] }
  0x50   : > { %s603_s28 = sld [smem:[#allocation7 + %s601_s26]] }
  0x55   : > { %s604_s10 = scalar_lea.vmem %s4544_s2, %s602_s27 }
  0x56   : > { %v621_v10 = vld [vmem:[%s604_s10] sm:$0x1] }
  0x57   : > { %622 = vst [vmem:[#allocation2 + $0x5] sm:$0x1] %v621_v10 }
  0x58   : > { %640 = vsyncadd [#allocation4 + $0x5], 16  ;;  %s641_s13 = scalar_lea.vmem %s4545_s3, %s603_s28 }
  0x59   : > { %v658_v11 = vld [vmem:[%s641_s13] sm:$0x1] }
  0x5a   : > { %659 = vst [vmem:[#allocation3 + $0x5] sm:$0x1] %v658_v11 }
  0x5b   : > { %677 = vsyncadd [#allocation4 + $0xd], 16  ;;  %s678_s14 = sadd.s32 6, %s3923_s1 }
  0x5c   : > { %s679_s15 = sld [smem:[#allocation6 + %s678_s14]] }
  0x5d   : > { %s680_s16 = sld [smem:[#allocation7 + %s678_s14]] }
  0x62   : > { %s681_s8 = scalar_lea.vmem %s4544_s2, %s679_s15 }
  0x63   : > { %v698_v12 = vld [vmem:[%s681_s8] sm:$0x1] }
  0x64   : > { %699 = vst [vmem:[#allocation2 + $0x6] sm:$0x1] %v698_v12 }
  0x65   : > { %717 = vsyncadd [#allocation4 + $0x6], 16  ;;  %s718_s22 = scalar_lea.vmem %s4545_s3, %s680_s16 }
  0x66   : > { %v735_v13 = vld [vmem:[%s718_s22] sm:$0x1] }
  0x67   : > { %736 = vst [vmem:[#allocation3 + $0x6] sm:$0x1] %v735_v13 }
  0x68   : > { %754 = vsyncadd [#allocation4 + $0xe], 16  ;;  %s755_s24 = sadd.s32 7, %s3923_s1 }
  0x69   : > { %s756_s25 = sld [smem:[#allocation6 + %s755_s24]] }
  0x6a   : > { %s757_s26 = sld [smem:[#allocation7 + %s755_s24]] }
  0x6f   : > { %s758_s29 = scalar_lea.vmem %s4544_s2, %s756_s25 }
  0x70   : > { %v775_v14 = vld [vmem:[%s758_s29] sm:$0x1] }
  0x71   : > { %776 = vst [vmem:[#allocation2 + $0x7] sm:$0x1] %v775_v14 }
  0x72   : > { %794 = vsyncadd [#allocation4 + $0x7], 16  ;;  %s795_s11 = scalar_lea.vmem %s4545_s3, %s757_s26 }
  0x73   : > { %v812_v15 = vld [vmem:[%s795_s11] sm:$0x1] }
  0x74   : > { %813 = vst [vmem:[#allocation3 + $0x7] sm:$0x1] %v812_v15 }
  0x75   : > { %831 = vsyncadd [#allocation4 + $0xf], 16 }
  0x76   : > { %3818 = dma.done.wait [#allocation4], 16 }
  0x77   : > { %3819 = vsyncadd [#allocation4], 4294967280 }
  0x78   : > { %3820 = dma.done.wait [#allocation4 + $0x8], 16 }
  0x79   : > { %3821 = vsyncadd [#allocation4 + $0x8], 4294967280 }
  0x7a   : > { %3822 = dma.done.wait [#allocation4 + $0x1], 16 }
  0x7b   : > { %3823 = vsyncadd [#allocation4 + $0x1], 4294967280 }
  0x7c   : > { %3824 = dma.done.wait [#allocation4 + $0x9], 16 }
  0x7d   : > { %3825 = vsyncadd [#allocation4 + $0x9], 4294967280 }
  0x7e   : > { %3826 = dma.done.wait [#allocation4 + $0x2], 16 }
  0x7f   : > { %3827 = vsyncadd [#allocation4 + $0x2], 4294967280 }
  0x80   : > { %3828 = dma.done.wait [#allocation4 + $0xa], 16 }
  0x81   : > { %3829 = vsyncadd [#allocation4 + $0xa], 4294967280 }
  0x82   : > { %3830 = dma.done.wait [#allocation4 + $0x3], 16 }
  0x83   : > { %3831 = vsyncadd [#allocation4 + $0x3], 4294967280 }
  0x84   : > { %3832 = dma.done.wait [#allocation4 + $0xb], 16 }
  0x85   : > { %3833 = vsyncadd [#allocation4 + $0xb], 4294967280 }
  0x86   : > { %3834 = dma.done.wait [#allocation4 + $0x4], 16 }
  0x87   : > { %3835 = vsyncadd [#allocation4 + $0x4], 4294967280 }
  0x88   : > { %3836 = dma.done.wait [#allocation4 + $0xc], 16 }
  0x89   : > { %3837 = vsyncadd [#allocation4 + $0xc], 4294967280 }
  0x8a   : > { %3838 = dma.done.wait [#allocation4 + $0x5], 16 }
  0x8b   : > { %3839 = vsyncadd [#allocation4 + $0x5], 4294967280 }
  0x8c   : > { %3840 = dma.done.wait [#allocation4 + $0xd], 16 }
  0x8d   : > { %3841 = vsyncadd [#allocation4 + $0xd], 4294967280 }
  0x8e   : > { %3842 = dma.done.wait [#allocation4 + $0x6], 16 }
  0x8f   : > { %3843 = vsyncadd [#allocation4 + $0x6], 4294967280 }
  0x90   : > { %3844 = dma.done.wait [#allocation4 + $0xe], 16 }
  0x91   : > { %3845 = vsyncadd [#allocation4 + $0xe], 4294967280 }
  0x92   : > { %3846 = dma.done.wait [#allocation4 + $0x7], 16 }
  0x93   : > { %3847 = vsyncadd [#allocation4 + $0x7], 4294967280 }
  0x94   : > { %3848 = dma.done.wait [#allocation4 + $0xf], 16 }
  0x95   : > { %3849 = vsyncadd [#allocation4 + $0xf], 4294967280  ;;  %vm899_vm0 = vcmask 130048   ;;  %v891_v16 = vld [vmem:[%s4547_s5 + $0x40] sm:$0xff]  ;;  %v866_v18 = vld [vmem:[#allocation3] sm:$0xff]  ;;  %s3519_s16 = sld [smem:[#allocation8]] }
  0x96   : > { %v883_v17 = vld [vmem:[%s4547_s5] sm:$0xff]  ;;  %v917_v19 = vand.u32 4294901760, %v891_v16  ;;  %v901_v21 = vsel %vm899_vm0, %v866_v18, 0  ;;  %v892_v22 = vld [vmem:[%s4547_s5 + $0x48] sm:$0xff]  ;;  %v893_v24 = vld [vmem:[%s4547_s5 + $0x50] sm:$0xff]  ;;  %vm3527_vm1 = vcmask 57344  }
  0x97   : > { %v3994_v20 = vand.u32 4294901760, %v883_v17  ;;  %v884_v23 = vld [vmem:[%s4547_s5 + $0x8] sm:$0xff]  ;;  %v4006_v25 = vand.u32 4294901760, %v901_v21  ;;  %v1076_v26 = vand.u32 4294901760, %v892_v22  ;;  %v4011_v30 = vand.u32 4294901760, %v893_v24  ;;  %v885_v31 = vld [vmem:[%s4547_s5 + $0x10] sm:$0xff] }
  0x98   : > { %v4008_v27 = vand.u32 4294901760, %v884_v23  ;;  %v945_v28 = vsub.f32 %v891_v16, %v917_v19  ;;  %1002 = vmatpush.msra.mxu3 %v917_v19  ;;  %918 = vmatpush.msra.mxu0 %v917_v19  ;;  %v894_v35 = vld [vmem:[%s4547_s5 + $0x58] sm:$0xff]  ;;  %v4028_v41 = vand.u32 4294901760, %v885_v31  ;;  %v895_v6 = vld [vmem:[%s4547_s5 + $0x60] sm:$0xff]  ;;  %v896_v10 = vld [vmem:[%s4547_s5 + $0x68] sm:$0xff] }
  0x99   : > { %v951_v29 = vsub.f32 %v883_v17, %v3994_v20  ;;  %v4017_v32 = vsub.f32 %v901_v21, %v4006_v25  ;;  %v1104_v33 = vsub.f32 %v892_v22, %v1076_v26  ;;  %v886_v42 = vld [vmem:[%s4547_s5 + $0x18] sm:$0xff]  ;;  %v4034_v45 = vsub.f32 %v893_v24, %v4011_v30  ;;  %v887_v8 = vld [vmem:[%s4547_s5 + $0x20] sm:$0xff]  ;;  %v888_v12 = vld [vmem:[%s4547_s5 + $0x28] sm:$0xff] }
  0x9a   : > { %v1110_v34 = vsub.f32 %v884_v23, %v4008_v27  ;;  %977 = vmatpush.msra.mxu2 %v945_v28  ;;  %1004 = vmatpush.msra.mxu3 %v3994_v20  ;;  %v946_v36 = vand.u32 4294901760, %v945_v28  ;;  %v4036_v46 = vand.u32 4294901760, %v894_v35  ;;  %v4042_v52 = vand.u32 4294901760, %v886_v42 }
  0x9b   : > { %v952_v37 = vand.u32 4294901760, %v951_v29  ;;  %v4025_v38 = vand.u32 4294901760, %v4017_v32  ;;  %920 = vmatpush.msra.mxu0 %v3994_v20  ;;  %v1105_v39 = vand.u32 4294901760, %v1104_v33  ;;  %v1269_v56 = vsub.f32 %v885_v31, %v4028_v41 }
  0x9c   : > { %v1111_v40 = vand.u32 4294901760, %v1110_v34  ;;  %980 = vmatpush.msra.mxu2 %v951_v29  ;;  %v947_v43 = vsub.f32 %v945_v28, %v946_v36  ;;  %v1264_v57 = vand.u32 4294901760, %v4034_v45  ;;  %v4050_v58 = vsub.f32 %v894_v35, %v4036_v46 }
  0x9d   : > { %1029 = vmatpush.msrb.mxu0 %v946_v36  ;;  %v953_v44 = vsub.f32 %v951_v29, %v952_v37  ;;  %983 = vmatmul.f32.vlgmr.msra.gmra.mxu2 %v4017_v32  ;;  %v924_v47 = vsub.f32 %v4017_v32, %v4025_v38  ;;  %v1106_v48 = vsub.f32 %v1104_v33, %v1105_v39  ;;  %v1270_v60 = vand.u32 4294901760, %v1269_v56  ;;  %v898_v36 = vld [vmem:[%s4547_s5 + $0x78] sm:$0xff] }
  0x9e   : > { %1008 = vmatmul.f32.vlgmr.msra.gmra.mxu3 %v4025_v38  ;;  %v1112_v49 = vsub.f32 %v1110_v34, %v1111_v40  ;;  %1077 = vmatpush.msrb.mxu2 %v1076_v26  ;;  %v948_v50 = vand.u32 4294901760, %v947_v43  ;;  %v4054_v59 = vsub.f32 %v886_v42, %v4042_v52  ;;  %v1265_v61 = vsub.f32 %v4034_v45, %v1264_v57 }
  0x9f   : > { %v954_v51 = vand.u32 4294901760, %v953_v44  ;;  %1033 = vmatpush.msrb.mxu0 %v952_v37  ;;  %v4044_v53 = vand.u32 4294901760, %v924_v47  ;;  %v1107_v54 = vand.u32 4294901760, %v1106_v48  ;;  %v1423_v62 = vand.u32 4294901760, %v4050_v58 }
  0xa0   : > { %v1113_v55 = vand.u32 4294901760, %v1112_v49  ;;  %949 = vmatpush.msra.mxu1 %v948_v50  ;;  %1079 = vmatpush.msrb.mxu2 %v4008_v27  ;;  %v1429_v63 = vand.u32 4294901760, %v4054_v59  ;;  %v1271_v0 = vsub.f32 %v1269_v56, %v1270_v60  ;;  %v1266_v1 = vand.u32 4294901760, %v1265_v61 }
  0xa1   : > { %926 = vmatmul.f32.vlgmr.msra.gmra.mxu0 %v4044_v53  ;;  %1108 = vmatpush.msrb.mxu3 %v1107_v54  ;;  %v1424_v2 = vsub.f32 %v4050_v58, %v1423_v62  ;;  %v4083_v9 = vand.u32 4294901760, %v895_v6  ;;  %v4090_v11 = vand.u32 4294901760, %v887_v8  ;;  %v4096_v13 = vand.u32 4294901760, %v896_v10 }
  0xa2   : > { %955 = vmatpush.msra.mxu1 %v954_v51  ;;  %1188 = vmatpush.msra.mxu2 %v1105_v39  ;;  %v1430_v3 = vsub.f32 %v4054_v59, %v1429_v63  ;;  %v1272_v4 = vand.u32 4294901760, %v1271_v0  ;;  %v4102_v15 = vand.u32 4294901760, %v888_v12  ;;  %v890_v39 = vld [vmem:[%s4547_s5 + $0x38] sm:$0xff]  ;;  %v868_v0 = vld [vmem:[%s4546_s4 + $0x8] sm:$0xff] }
  0xa3   : > { %957 = vmatmul.f32.vlgmr.msra.gmra.mxu1 %v4006_v25  ;;  %1114 = vmatpush.msrb.mxu3 %v1113_v55  ;;  %v1425_v5 = vand.u32 4294901760, %v1424_v2  ;;  %v1581_v14 = vsub.f32 %v895_v6, %v4083_v9  ;;  %v1587_v16 = vsub.f32 %v887_v8, %v4090_v11  ;;  %v4108_v17 = vsub.f32 %v896_v10, %v4096_v13 }
  0xa4   : > { %1054 = vmatpush.msrb.mxu1 %v917_v19  ;;  %1136 = vmatpush.msra.mxu0 %v1104_v33  ;;  %v1431_v7 = vand.u32 4294901760, %v1430_v3  ;;  %v4113_v19 = vsub.f32 %v888_v12, %v4102_v15  ;;  %v897_v33 = vld [vmem:[%s4547_s5 + $0x70] sm:$0xff]  ;;  %v4160_v42 = vand.u32 4294901760, %v890_v39  ;;  %v4218_v3 = vand.u32 4294901760, %v868_v0 }
  0xa5   : > { %1085 = vmatmul.f32.vlgmr.msrb.gmra.mxu2 %v4044_v53  ;;  %1213 = vmatpush.msra.mxu3 %v1076_v26  ;;  %v1582_v18 = vand.u32 4294901760, %v1581_v14  ;;  %v1741_v21 = vand.u32 4294901760, %v4108_v17  ;;  %v4142_v35 = vand.u32 4294901760, %v897_v33 }
  0xa6   : > { %1116 = vmatmul.f32.vlgmr.msrb.gmra.mxu3 %v4006_v25  ;;  %1056 = vmatpush.msrb.mxu1 %v3994_v20  ;;  %v1588_v20 = vand.u32 4294901760, %v1587_v16  ;;  %v1747_v23 = vand.u32 4294901760, %v4113_v19  ;;  %v4229_v8 = vsub.f32 %v868_v0, %v4218_v3 }
  0xa7   : > { %1192 = vmatpush.msra.mxu2 %v1111_v40  ;;  %1139 = vmatpush.msra.mxu0 %v1110_v34  ;;  %v1583_v22 = vsub.f32 %v1581_v14, %v1582_v18  ;;  %v889_v34 = vld [vmem:[%s4547_s5 + $0x30] sm:$0xff]  ;;  %v4154_v40 = vand.u32 4294901760, %v898_v36 }
  0xa8   : > { %1161 = vmatpush.msra.mxu1 %v1076_v26  ;;  %1215 = vmatpush.msra.mxu3 %v4008_v27  ;;  %v1589_v24 = vsub.f32 %v1587_v16, %v1588_v20  ;;  %v1742_v26 = vsub.f32 %v4108_v17, %v1741_v21  ;;  %v1748_v28 = vsub.f32 %v4113_v19, %v1747_v23  ;;  %v4148_v37 = vand.u32 4294901760, %v889_v34 }
  0xa9   : > { %1035 = vmatmul.f32.vlgmr.msrb.gmra.mxu0 %v4006_v25  ;;  %1295 = vmatpush.msrb.mxu2 %v4034_v45  ;;  %v4166_v44 = vsub.f32 %v898_v36, %v4154_v40 }
  0xaa   : > { %1163 = vmatpush.msra.mxu1 %v4008_v27  ;;  %1236 = vmatpush.msrb.mxu0 %v4011_v30  ;;  %v1584_v27 = vand.u32 4294901760, %v1583_v22  ;;  %v1590_v29 = vand.u32 4294901760, %v1589_v24  ;;  %v1749_v31 = vand.u32 4294901760, %v1748_v28  ;;  %v1905_v43 = vsub.f32 %v889_v34, %v4148_v37  ;;  %v869_v24 = vld [vmem:[%s4546_s4 + $0x10] sm:$0xff] }
  0xab   : > { %1058 = vmatmul.f32.vlgmr.msrb.gmra.mxu1 %v4006_v25  ;;  %1320 = vmatpush.msrb.mxu3 %v4011_v30  ;;  %v2059_v48 = vand.u32 4294901760, %v4166_v44  ;;  %v4275_v28 = vand.u32 4294901760, %v869_v24 }
  0xac   : > { %1267 = vmatpush.msrb.mxu1 %v1266_v1  ;;  %1298 = vmatpush.msrb.mxu2 %v1269_v56  ;;  %v1906_v47 = vand.u32 4294901760, %v1905_v43 }
  0xad   : > { %1194 = vmatmul.f32.vlgmr.msra.gmra.mxu2 %v4006_v25  ;;  %1238 = vmatpush.msrb.mxu0 %v4028_v41 }
  0xae   : > { %1217 = vmatmul.f32.vlgmr.msra.gmra.mxu3 %v4006_v25  ;;  %1273 = vmatpush.msrb.mxu1 %v1272_v4  ;;  %v1907_v51 = vsub.f32 %v1905_v43, %v1906_v47 }
  0xaf   : > { %1322 = vmatpush.msrb.mxu3 %v4028_v41  ;;  %1395 = vmatpush.msra.mxu2 %v4036_v46 }
  0xb0   : > { %v1908_v56 = vand.u32 4294901760, %v1907_v51 }
  0xb1   : > { %1426 = vmatpush.msra.mxu3 %v1425_v5  ;;  %1142 = vmatmul.f32.vlgmr.msra.gmra.mxu0 %v4017_v32  ;;  %v865_v5 = vld [vmem:[#allocation2] sm:$0xff] }
  0xb2   : > { %1397 = vmatpush.msra.mxu2 %v4042_v52  ;;  %1347 = vmatpush.msra.mxu0 %v1264_v57 }
  0xb3   : > { %1432 = vmatpush.msra.mxu3 %v1431_v7  ;;  %1167 = vmatmul.f32.vlgmr.msra.gmra.mxu1 %v4025_v38 }
  0xb4   : > { %1372 = vmatpush.msra.mxu1 %v4011_v30  ;;  %1351 = vmatpush.msra.mxu0 %v1270_v60  ;;  %v1743_v30 = vand.u32 4294901760, %v1742_v26  ;;  %v867_v60 = vld [vmem:[%s4546_s4] sm:$0xff] }
  0xb5   : > { %1301 = vmatmul.f32.vlgmr.msrb.gmra.mxu2 %v4017_v32 }
  0xb6   : > { %1326 = vmatmul.f32.vlgmr.msrb.gmra.mxu3 %v4025_v38  ;;  %1374 = vmatpush.msra.mxu1 %v4028_v41  ;;  %v1899_v41 = vsub.f32 %v897_v33, %v4142_v35 }
  0xb7   : > { %1506 = vmatpush.msrb.mxu2 %v1423_v62  ;;  %1531 = vmatpush.msrb.mxu3 %v4036_v46  ;;  %v876_v62 = vld [vmem:[%s4546_s4 + $0x48] sm:$0xff] }
  0xb8   : > { %v1900_v45 = vand.u32 4294901760, %v1899_v41  ;;  %v4212_v1 = vand.u32 4294901760, %v876_v62 }
  0xb9   : > { %1510 = vmatpush.msrb.mxu2 %v1429_v63  ;;  %1244 = vmatmul.f32.vlgmr.msrb.gmra.mxu0 %v4044_v53  ;;  %v4206_v63 = vand.u32 4294901760, %v867_v60 }
  0xba   : > { %1533 = vmatpush.msrb.mxu3 %v4042_v52  ;;  %1454 = vmatpush.msrb.mxu0 %v4050_v58  ;;  %v1901_v49 = vsub.f32 %v1899_v41, %v1900_v45  ;;  %v4224_v6 = vsub.f32 %v876_v62, %v4212_v1 }
  0xbb   : > { %1275 = vmatmul.f32.vlgmr.msrb.gmra.mxu1 %v4006_v25  ;;  %v2226_v4 = vsub.f32 %v867_v60, %v4206_v63 }
  0xbc   : > { %1479 = vmatpush.msrb.mxu1 %v4036_v46  ;;  %1457 = vmatpush.msrb.mxu0 %v4054_v59  ;;  %v4171_v46 = vsub.f32 %v890_v39, %v4160_v42  ;;  %v1902_v54 = vand.u32 4294901760, %v1901_v49  ;;  %v875_v59 = vld [vmem:[%s4546_s4 + $0x40] sm:$0xff] }
  0xbd   : > { %1403 = vmatmul.f32.vlgmr.msra.gmra.mxu2 %v4044_v53  ;;  %v4200_v61 = vand.u32 4294901760, %v875_v59  ;;  %v2227_v10 = vand.u32 4294901760, %v2226_v4  ;;  %v879_v49 = vld [vmem:[%s4546_s4 + $0x60] sm:$0xff] }
  0xbe   : > { %1434 = vmatmul.f32.vlgmr.msra.gmra.mxu3 %v4006_v25  ;;  %1481 = vmatpush.msrb.mxu1 %v4042_v52  ;;  %v2065_v50 = vand.u32 4294901760, %v4171_v46  ;;  %v2060_v52 = vsub.f32 %v4166_v44, %v2059_v48  ;;  %v4329_v51 = vand.u32 4294901760, %v879_v49 }
  0xbf   : > { %1613 = vmatpush.msra.mxu2 %v1581_v14  ;;  %1638 = vmatpush.msra.mxu3 %v4083_v9  ;;  %v2220_v2 = vsub.f32 %v875_v59, %v4200_v61  ;;  %v2386_v14 = vand.u32 4294901760, %v4229_v8 }
  0xc0   : > { %v2066_v55 = vsub.f32 %v4171_v46, %v2065_v50  ;;  %v2061_v57 = vand.u32 4294901760, %v2060_v52  ;;  %v880_v52 = vld [vmem:[%s4546_s4 + $0x68] sm:$0xff] }
  0xc1   : > { %1616 = vmatpush.msra.mxu2 %v1587_v16  ;;  %1353 = vmatmul.f32.vlgmr.msra.gmra.mxu0 %v4006_v25  ;;  %v2221_v7 = vand.u32 4294901760, %v2220_v2 }
  0xc2   : > { %1640 = vmatpush.msra.mxu3 %v4090_v11  ;;  %1554 = vmatpush.msra.mxu0 %v4083_v9  ;;  %v2067_v58 = vand.u32 4294901760, %v2066_v55  ;;  %v872_v55 = vld [vmem:[%s4546_s4 + $0x28] sm:$0xff] }
  0xc3   : > { %1376 = vmatmul.f32.vlgmr.msra.gmra.mxu1 %v4006_v25  ;;  %v2222_v12 = vsub.f32 %v2220_v2, %v2221_v7 }
  0xc4   : > { %1585 = vmatpush.msra.mxu1 %v1584_v27  ;;  %1556 = vmatpush.msra.mxu0 %v4090_v11 }
  0xc5   : > { %1512 = vmatmul.f32.vlgmr.msrb.gmra.mxu2 %v4006_v25 }
  0xc6   : > { %1535 = vmatmul.f32.vlgmr.msrb.gmra.mxu3 %v4006_v25  ;;  %1591 = vmatpush.msra.mxu1 %v1590_v29  ;;  %v870_v29 = vld [vmem:[%s4546_s4 + $0x18] sm:$0xff] }
  0xc7   : > { %1713 = vmatpush.msrb.mxu2 %v4096_v13  ;;  %1744 = vmatpush.msrb.mxu3 %v1743_v30  ;;  %v4289_v33 = vand.u32 4294901760, %v870_v29 }
  0xc9   : > { %1715 = vmatpush.msrb.mxu2 %v4102_v15  ;;  %1460 = vmatmul.f32.vlgmr.msrb.gmra.mxu0 %v4017_v32  ;;  %v4300_v36 = vsub.f32 %v870_v29, %v4289_v33 }
  0xca   : > { %1750 = vmatpush.msrb.mxu3 %v1749_v31  ;;  %1665 = vmatpush.msrb.mxu0 %v1582_v18  ;;  %v2387_v18 = vsub.f32 %v4229_v8, %v2386_v14 }
  0xcb   : > { %1485 = vmatmul.f32.vlgmr.msrb.gmra.mxu1 %v4025_v38 }
  0xcc   : > { %1690 = vmatpush.msrb.mxu1 %v4083_v9  ;;  %1669 = vmatpush.msrb.mxu0 %v1588_v20  ;;  %v2176_v9 = vsel %vm899_vm0, %v865_v5, 0  ;;  %v2388_v22 = vand.u32 4294901760, %v2387_v18  ;;  %v881_v18 = vld [vmem:[%s4546_s4 + $0x70] sm:$0xff] }
  0xcd   : > { %1619 = vmatmul.f32.vlgmr.msra.gmra.mxu2 %v4017_v32 }
  0xce   : > { %1644 = vmatmul.f32.vlgmr.msra.gmra.mxu3 %v4025_v38  ;;  %1692 = vmatpush.msrb.mxu1 %v4090_v11  ;;  %v2380_v11 = vand.u32 4294901760, %v4224_v6 }
  0xcf   : > { %1824 = vmatpush.msra.mxu2 %v1741_v21  ;;  %1849 = vmatpush.msra.mxu3 %v4096_v13 }
  0xd0   : > { %v2381_v16 = vsub.f32 %v4224_v6, %v2380_v11 }
  0xd1   : > { %1828 = vmatpush.msra.mxu2 %v1747_v23  ;;  %1562 = vmatmul.f32.vlgmr.msra.gmra.mxu0 %v4044_v53  ;;  %v877_v23 = vld [vmem:[%s4546_s4 + $0x50] sm:$0xff] }
  0xd2   : > { %1851 = vmatpush.msra.mxu3 %v4102_v15  ;;  %1772 = vmatpush.msra.mxu0 %v4108_v17  ;;  %v2223_v17 = vand.u32 4294901760, %v2222_v12  ;;  %v2382_v20 = vand.u32 4294901760, %v2381_v16  ;;  %v4267_v26 = vand.u32 4294901760, %v877_v23 }
  0xd3   : > { %1593 = vmatmul.f32.vlgmr.msra.gmra.mxu1 %v4006_v25 }
  0xd4   : > { %1797 = vmatpush.msra.mxu1 %v4096_v13  ;;  %1775 = vmatpush.msra.mxu0 %v4113_v19  ;;  %v4239_v13 = vand.u32 4294901760, %v2176_v9 }
  0xd5   : > { %1721 = vmatmul.f32.vlgmr.msrb.gmra.mxu2 %v4044_v53 }
  0xd6   : > { %1752 = vmatmul.f32.vlgmr.msrb.gmra.mxu3 %v4006_v25  ;;  %1799 = vmatpush.msra.mxu1 %v4102_v15  ;;  %v2228_v15 = vsub.f32 %v2226_v4, %v2227_v10 }
  0xd7   : > { %1931 = vmatpush.msrb.mxu2 %v1899_v41  ;;  %1956 = vmatpush.msrb.mxu3 %v4142_v35  ;;  %v2704_v41 = vand.u32 4294901760, %v4300_v36 }
  0xd8   : > { %v2229_v19 = vand.u32 4294901760, %v2228_v15 }
  0xd9   : > { %1934 = vmatpush.msrb.mxu2 %v1905_v43  ;;  %1671 = vmatmul.f32.vlgmr.msrb.gmra.mxu0 %v4006_v25 }
  0xda   : > { %1958 = vmatpush.msrb.mxu3 %v4148_v37  ;;  %1872 = vmatpush.msrb.mxu0 %v4142_v35 }
  0xdb   : > { %1694 = vmatmul.f32.vlgmr.msrb.gmra.mxu1 %v4006_v25 }
  0xdc   : > { %1903 = vmatpush.msrb.mxu1 %v1902_v54  ;;  %1874 = vmatpush.msrb.mxu0 %v4148_v37 }
  0xdd   : > { %1830 = vmatmul.f32.vlgmr.msra.gmra.mxu2 %v4006_v25 }
  0xde   : > { %1853 = vmatmul.f32.vlgmr.msra.gmra.mxu3 %v4006_v25  ;;  %1909 = vmatpush.msrb.mxu1 %v1908_v56  ;;  %v4341_v56 = vand.u32 4294901760, %v880_v52 }
  0xdf   : > { %2031 = vmatpush.msra.mxu2 %v4154_v40  ;;  %2062 = vmatpush.msra.mxu3 %v2061_v57  ;;  %v4345_v57 = vsub.f32 %v879_v49, %v4329_v51 }
  0xe0   : > { %v4357_v60 = vsub.f32 %v880_v52, %v4341_v56 }
  0xe1   : > { %2033 = vmatpush.msra.mxu2 %v4160_v42  ;;  %1778 = vmatmul.f32.vlgmr.msra.gmra.mxu0 %v4017_v32 }
  0xe2   : > { %2068 = vmatpush.msra.mxu3 %v2067_v58  ;;  %1983 = vmatpush.msra.mxu0 %v1900_v45  ;;  %v2705_v45 = vsub.f32 %v4300_v36, %v2704_v41  ;;  %v4349_v58 = vand.u32 4294901760, %v872_v55  ;;  %v3016_v0 = vand.u32 4294901760, %v4357_v60 }
  0xe3   : > { %1803 = vmatmul.f32.vlgmr.msra.gmra.mxu1 %v4025_v38 }
  0xe4   : > { %2008 = vmatpush.msra.mxu1 %v4142_v35  ;;  %1987 = vmatpush.msra.mxu0 %v1906_v47  ;;  %v4363_v62 = vsub.f32 %v872_v55, %v4349_v58  ;;  %v3017_v5 = vsub.f32 %v4357_v60, %v3016_v0 }
  0xe5   : > { %1937 = vmatmul.f32.vlgmr.msrb.gmra.mxu2 %v4017_v32 }
  0xe6   : > { %1962 = vmatmul.f32.vlgmr.msrb.gmra.mxu3 %v4025_v38  ;;  %2010 = vmatpush.msra.mxu1 %v4148_v37  ;;  %v3018_v15 = vand.u32 4294901760, %v3017_v5 }
  0xe7   : > { %2142 = vmatpush.msrb.mxu2 %v2059_v48  ;;  %2167 = vmatpush.msrb.mxu3 %v4154_v40  ;;  %v2706_v48 = vand.u32 4294901760, %v2705_v45 }
  0xe9   : > { %2146 = vmatpush.msrb.mxu2 %v2065_v50  ;;  %1880 = vmatmul.f32.vlgmr.msrb.gmra.mxu0 %v4044_v53  ;;  %v871_v50 = vld [vmem:[%s4546_s4 + $0x20] sm:$0xff] }
  0xea   : > { %2169 = vmatpush.msrb.mxu3 %v4160_v42  ;;  %2090 = vmatpush.msrb.mxu0 %v4166_v44  ;;  %v4335_v54 = vand.u32 4294901760, %v871_v50 }
  0xeb   : > { %1911 = vmatmul.f32.vlgmr.msrb.gmra.mxu1 %v4006_v25 }
  0xec   : > { %2115 = vmatpush.msrb.mxu1 %v4154_v40  ;;  %2093 = vmatpush.msrb.mxu0 %v4171_v46  ;;  %v4353_v59 = vsub.f32 %v871_v50, %v4335_v54 }
  0xed   : > { %2039 = vmatmul.f32.vlgmr.msra.gmra.mxu2 %v4044_v53  ;;  %v4247_v53 = vsub.f32 %v2176_v9, %v4239_v13 }
  0xee   : > { %2070 = vmatmul.f32.vlgmr.msra.gmra.mxu3 %v4006_v25  ;;  %2117 = vmatpush.msrb.mxu1 %v4160_v42 }
  0xef   : > { %2252 = vmatpush.msra.mxu2 %v2220_v2  ;;  %2277 = vmatpush.msra.mxu3 %v4200_v61  ;;  %v4257_v21 = vand.u32 4294901760, %v4247_v53  ;;  %v3022_v2 = vand.u32 4294901760, %v4363_v62 }
  0xf1   : > { %2255 = vmatpush.msra.mxu2 %v2226_v4  ;;  %1989 = vmatmul.f32.vlgmr.msra.gmra.mxu0 %v4006_v25  ;;  %v2199_v27 = vsub.f32 %v4247_v53, %v4257_v21 }
  0xf2   : > { %2279 = vmatpush.msra.mxu3 %v4206_v63  ;;  %2193 = vmatpush.msra.mxu0 %v4200_v61 }
  0xf3   : > { %2012 = vmatmul.f32.vlgmr.msra.gmra.mxu1 %v4006_v25  ;;  %v4287_v31 = vand.u32 4294901760, %v2199_v27 }
  0xf4   : > { %2224 = vmatpush.msra.mxu1 %v2223_v17  ;;  %2195 = vmatpush.msra.mxu0 %v4206_v63 }
  0xf5   : > { %2148 = vmatmul.f32.vlgmr.msrb.gmra.mxu2 %v4006_v25 }
  0xf6   : > { %2171 = vmatmul.f32.vlgmr.msrb.gmra.mxu3 %v4006_v25  ;;  %2230 = vmatpush.msra.mxu1 %v2229_v19  ;;  %v878_v25 = vld [vmem:[%s4546_s4 + $0x58] sm:$0xff] }
  0xf7   : > { %2352 = vmatpush.msrb.mxu2 %v4212_v1  ;;  %2383 = vmatpush.msrb.mxu3 %v2382_v20  ;;  %v4281_v30 = vand.u32 4294901760, %v878_v25 }
  0xf9   : > { %2354 = vmatpush.msrb.mxu2 %v4218_v3  ;;  %2096 = vmatmul.f32.vlgmr.msrb.gmra.mxu0 %v4017_v32  ;;  %v2538_v32 = vsub.f32 %v877_v23, %v4267_v26  ;;  %v4295_v34 = vsub.f32 %v878_v25, %v4281_v30  ;;  %v882_v25 = vld [vmem:[%s4546_s4 + $0x78] sm:$0xff] }
  0xfa   : > { %2389 = vmatpush.msrb.mxu3 %v2388_v22  ;;  %2304 = vmatpush.msrb.mxu0 %v2221_v7  ;;  %v873_v22 = vld [vmem:[%s4546_s4 + $0x30] sm:$0xff] }
  0xfb   : > { %2121 = vmatmul.f32.vlgmr.msrb.gmra.mxu1 %v4025_v38  ;;  %v2544_v38 = vsub.f32 %v869_v24, %v4275_v28  ;;  %v2539_v35 = vand.u32 4294901760, %v2538_v32  ;;  %v2698_v39 = vand.u32 4294901760, %v4295_v34 }
  0xfc   : > { %2329 = vmatpush.msrb.mxu1 %v4200_v61  ;;  %2308 = vmatpush.msrb.mxu0 %v2227_v10  ;;  %v2857_v61 = vand.u32 4294901760, %v4345_v57 }
  0xfd   : > { %2258 = vmatmul.f32.vlgmr.msra.gmra.mxu2 %v4247_v53  ;;  %v2545_v37 = vand.u32 4294901760, %v2544_v38  ;;  %v2540_v40 = vsub.f32 %v2538_v32, %v2539_v35  ;;  %v2699_v43 = vsub.f32 %v4295_v34, %v2698_v39 }
  0xfe   : > { %2283 = vmatmul.f32.vlgmr.msra.gmra.mxu3 %v4257_v21  ;;  %2331 = vmatpush.msrb.mxu1 %v4206_v63  ;;  %v2863_v63 = vand.u32 4294901760, %v4353_v59 }
  0xff   : > { %2463 = vmatpush.msra.mxu2 %v2380_v11  ;;  %2488 = vmatpush.msra.mxu3 %v4212_v1  ;;  %v2546_v42 = vsub.f32 %v2544_v38, %v2545_v37  ;;  %v2541_v44 = vand.u32 4294901760, %v2540_v40  ;;  %v2700_v47 = vand.u32 4294901760, %v2699_v43  ;;  %v3023_v11 = vsub.f32 %v4363_v62, %v3022_v2 }
 0x100   : > { %v2864_v4 = vsub.f32 %v4353_v59, %v2863_v63 }
 0x101   : > { %2467 = vmatpush.msra.mxu2 %v2386_v14  ;;  %2201 = vmatmul.f32.vlgmr.msra.gmra.mxu0 %v4287_v31  ;;  %v2547_v46 = vand.u32 4294901760, %v2546_v42  ;;  %v3024_v17 = vand.u32 4294901760, %v3023_v11 }
 0x102   : > { %2490 = vmatpush.msra.mxu3 %v4218_v3  ;;  %2411 = vmatpush.msra.mxu0 %v4224_v6  ;;  %v2865_v12 = vand.u32 4294901760, %v2864_v4 }
 0x103   : > { %2232 = vmatmul.f32.vlgmr.msra.gmra.mxu1 %v4239_v13 }
 0x104   : > { %2436 = vmatpush.msra.mxu1 %v4212_v1  ;;  %2414 = vmatpush.msra.mxu0 %v4229_v8  ;;  %v2858_v1 = vsub.f32 %v4345_v57, %v2857_v61 }
 0x105   : > { %2360 = vmatmul.f32.vlgmr.msrb.gmra.mxu2 %v4287_v31 }
 0x106   : > { %2391 = vmatmul.f32.vlgmr.msrb.gmra.mxu3 %v4239_v13  ;;  %2438 = vmatpush.msra.mxu1 %v4218_v3  ;;  %v2859_v8 = vand.u32 4294901760, %v2858_v1 }
 0x107   : > { %2570 = vmatpush.msrb.mxu2 %v2538_v32  ;;  %2595 = vmatpush.msrb.mxu3 %v4267_v26  ;;  %v874_v32 = vld [vmem:[%s4546_s4 + $0x38] sm:$0xff] }
 0x109   : > { %2573 = vmatpush.msrb.mxu2 %v2544_v38  ;;  %2310 = vmatmul.f32.vlgmr.msrb.gmra.mxu0 %v4239_v13 }
 0x10a   : > { %2597 = vmatpush.msrb.mxu3 %v4275_v28  ;;  %2511 = vmatpush.msrb.mxu0 %v4267_v26 }
 0x10b   : > { %2333 = vmatmul.f32.vlgmr.msrb.gmra.mxu1 %v4239_v13 }
 0x10c   : > { %2542 = vmatpush.msrb.mxu1 %v2541_v44  ;;  %2513 = vmatpush.msrb.mxu0 %v4275_v28 }
 0x10d   : > { %2469 = vmatmul.f32.vlgmr.msra.gmra.mxu2 %v4239_v13 }
 0x10e   : > { %2492 = vmatmul.f32.vlgmr.msra.gmra.mxu3 %v4239_v13  ;;  %2548 = vmatpush.msrb.mxu1 %v2547_v46 }
 0x10f   : > { %2670 = vmatpush.msra.mxu2 %v4281_v30  ;;  %2701 = vmatpush.msra.mxu3 %v2700_v47 }
 0x111   : > { %2672 = vmatpush.msra.mxu2 %v4289_v33  ;;  %2417 = vmatmul.f32.vlgmr.msra.gmra.mxu0 %v4247_v53 }
 0x112   : > { %2707 = vmatpush.msra.mxu3 %v2706_v48  ;;  %2622 = vmatpush.msra.mxu0 %v2539_v35 }
 0x113   : > { %2442 = vmatmul.f32.vlgmr.msra.gmra.mxu1 %v4257_v21 }
 0x114   : > { %2647 = vmatpush.msra.mxu1 %v4267_v26  ;;  %2626 = vmatpush.msra.mxu0 %v2545_v37  ;;  %v4399_v26 = vand.u32 4294901760, %v881_v18 }
 0x115   : > { %2576 = vmatmul.f32.vlgmr.msrb.gmra.mxu2 %v4247_v53 }
 0x116   : > { %2601 = vmatmul.f32.vlgmr.msrb.gmra.mxu3 %v4257_v21  ;;  %2649 = vmatpush.msra.mxu1 %v4275_v28  ;;  %v4417_v38 = vsub.f32 %v881_v18, %v4399_v26 }
 0x117   : > { %2781 = vmatpush.msrb.mxu2 %v2698_v39  ;;  %2806 = vmatpush.msrb.mxu3 %v4281_v30 }
 0x118   : > { %v3175_v42 = vand.u32 4294901760, %v4417_v38 }
 0x119   : > { %2785 = vmatpush.msrb.mxu2 %v2704_v41  ;;  %2519 = vmatmul.f32.vlgmr.msrb.gmra.mxu0 %v4287_v31 }
 0x11a   : > { %2808 = vmatpush.msrb.mxu3 %v4289_v33  ;;  %2729 = vmatpush.msrb.mxu0 %v4295_v34  ;;  %v4421_v34 = vand.u32 4294901760, %v874_v32  ;;  %v3176_v49 = vsub.f32 %v4417_v38, %v3175_v42 }
 0x11b   : > { %2550 = vmatmul.f32.vlgmr.msrb.gmra.mxu1 %v4239_v13 }
 0x11c   : > { %2754 = vmatpush.msrb.mxu1 %v4281_v30  ;;  %2732 = vmatpush.msrb.mxu0 %v4300_v36  ;;  %v4407_v30 = vand.u32 4294901760, %v873_v22  ;;  %v4437_v45 = vsub.f32 %v874_v32, %v4421_v34 }
 0x11d   : > { %2678 = vmatmul.f32.vlgmr.msra.gmra.mxu2 %v4287_v31 }
 0x11e   : > { %2709 = vmatmul.f32.vlgmr.msra.gmra.mxu3 %v4239_v13  ;;  %v927_v3 = vpop.f32.mrf.mxu0  ;;  %2756 = vmatpush.msrb.mxu1 %v4289_v33  ;;  %v4413_v33 = vand.u32 4294901760, %v882_v25  ;;  %v4425_v36 = vsub.f32 %v873_v22, %v4407_v30 }
 0x11f   : > { %2888 = vmatpush.msra.mxu2 %v4345_v57  ;;  %2913 = vmatpush.msra.mxu3 %v4329_v51 }
 0x120   : > { %v958_v6 = vpop.f32.mrf.mxu1  ;;  %v984_v7 = vpop.f32.mrf.mxu2  ;;  %v4429_v39 = vsub.f32 %v882_v25, %v4413_v33  ;;  %v3181_v46 = vand.u32 4294901760, %v4425_v36 }
 0x121   : > { %2891 = vmatpush.msra.mxu2 %v4353_v59  ;;  %v959_v9 = vadd.f32 %v958_v6, %v927_v3  ;;  %2628 = vmatmul.f32.vlgmr.msra.gmra.mxu0 %v4239_v13  ;;  %v1009_v10 = vpop.f32.mrf.mxu3  ;;  %v3177_v59 = vand.u32 4294901760, %v3176_v49 }
 0x122   : > { %2915 = vmatpush.msra.mxu3 %v4335_v54  ;;  %2829 = vmatpush.msra.mxu0 %v4329_v51  ;;  %v3334_v48 = vand.u32 4294901760, %v4429_v39 }
 0x123   : > { %v985_v14 = vadd.f32 %v984_v7, %v959_v9  ;;  %2651 = vmatmul.f32.vlgmr.msra.gmra.mxu1 %v4239_v13 }
 0x124   : > { %2860 = vmatpush.msra.mxu1 %v2859_v8  ;;  %2831 = vmatpush.msra.mxu0 %v4335_v54  ;;  %v3335_v55 = vsub.f32 %v4429_v39, %v3334_v48 }
 0x125   : > { %v1010_v16 = vadd.f32 %v1009_v10, %v985_v14  ;;  %2787 = vmatmul.f32.vlgmr.msrb.gmra.mxu2 %v4239_v13 }
 0x126   : > { %2810 = vmatmul.f32.vlgmr.msrb.gmra.mxu3 %v4239_v13  ;;  %v1036_v19 = vpop.f32.mrf.mxu0  ;;  %2866 = vmatpush.msra.mxu1 %v2865_v12 }
 0x127   : > { %2988 = vmatpush.msrb.mxu2 %v4341_v56  ;;  %v1037_v20 = vadd.f32 %v1036_v19, %v1010_v16  ;;  %3019 = vmatpush.msrb.mxu3 %v3018_v15 }
 0x128   : > { %v1059_v23 = vpop.f32.mrf.mxu1  ;;  %v1086_v24 = vpop.f32.mrf.mxu2 }
 0x129   : > { %2990 = vmatpush.msrb.mxu2 %v4349_v58  ;;  %v4404_v27 = vadd.f32 %v1059_v23, %v1037_v20  ;;  %2735 = vmatmul.f32.vlgmr.msrb.gmra.mxu0 %v4247_v53  ;;  %v1117_v28 = vpop.f32.mrf.mxu3 }
 0x12a   : > { %3025 = vmatpush.msrb.mxu3 %v3024_v17  ;;  %v1118_v29 = vadd.f32 %v1117_v28, %v1086_v24  ;;  %2940 = vmatpush.msrb.mxu0 %v2857_v61 }
 0x12b   : > { %2760 = vmatmul.f32.vlgmr.msrb.gmra.mxu1 %v4257_v21 }
 0x12c   : > { %2965 = vmatpush.msrb.mxu1 %v4329_v51  ;;  %2944 = vmatpush.msrb.mxu0 %v2863_v63  ;;  %v3340_v51 = vand.u32 4294901760, %v4437_v45 }
 0x12d   : > { %2894 = vmatmul.f32.vlgmr.msra.gmra.mxu2 %v4247_v53 }
 0x12e   : > { %2919 = vmatmul.f32.vlgmr.msra.gmra.mxu3 %v4257_v21  ;;  %v1143_v35 = vpop.f32.mrf.mxu0  ;;  %2967 = vmatpush.msrb.mxu1 %v4335_v54  ;;  %v3182_v54 = vsub.f32 %v4425_v36, %v3181_v46 }
 0x12f   : > { %3099 = vmatpush.msra.mxu2 %v3016_v0  ;;  %v1144_v37 = vadd.f32 %v1143_v35, %v1118_v29  ;;  %3124 = vmatpush.msra.mxu3 %v4341_v56  ;;  %v3336_v0 = vand.u32 4294901760, %v3335_v55 }
 0x130   : > { %v1168_v40 = vpop.f32.mrf.mxu1  ;;  %v1195_v41 = vpop.f32.mrf.mxu2 }
 0x131   : > { %3103 = vmatpush.msra.mxu2 %v3022_v2  ;;  %v1169_v43 = vadd.f32 %v1168_v40, %v1144_v37  ;;  %2837 = vmatmul.f32.vlgmr.msra.gmra.mxu0 %v4287_v31  ;;  %v1218_v44 = vpop.f32.mrf.mxu3 }
 0x132   : > { %3126 = vmatpush.msra.mxu3 %v4349_v58  ;;  %3047 = vmatpush.msra.mxu0 %v4357_v60 }
 0x133   : > { %v1196_v47 = vadd.f32 %v1195_v41, %v1169_v43  ;;  %2868 = vmatmul.f32.vlgmr.msra.gmra.mxu1 %v4239_v13 }
 0x134   : > { %3072 = vmatpush.msra.mxu1 %v4341_v56  ;;  %3050 = vmatpush.msra.mxu0 %v4363_v62  ;;  %v3183_v62 = vand.u32 4294901760, %v3182_v54 }
 0x135   : > { %v4446_v50 = vadd.f32 %v1218_v44, %v1196_v47  ;;  %2996 = vmatmul.f32.vlgmr.msrb.gmra.mxu2 %v4287_v31 }
 0x136   : > { %3027 = vmatmul.f32.vlgmr.msrb.gmra.mxu3 %v4239_v13  ;;  %v1245_v52 = vpop.f32.mrf.mxu0  ;;  %3074 = vmatpush.msra.mxu1 %v4349_v58  ;;  %v3341_v58 = vsub.f32 %v4437_v45, %v3340_v51 }
 0x137   : > { %3206 = vmatpush.msrb.mxu2 %v4417_v38  ;;  %3231 = vmatpush.msrb.mxu3 %v4399_v26 }
 0x138   : > { %v1276_v56 = vpop.f32.mrf.mxu1  ;;  %v1302_v57 = vpop.f32.mrf.mxu2  ;;  %v3342_v2 = vand.u32 4294901760, %v3341_v58 }
 0x139   : > { %3209 = vmatpush.msrb.mxu2 %v4425_v36  ;;  %v1277_v60 = vadd.f32 %v1276_v56, %v1245_v52  ;;  %2946 = vmatmul.f32.vlgmr.msrb.gmra.mxu0 %v4239_v13  ;;  %v1327_v61 = vpop.f32.mrf.mxu3 }
 0x13a   : > { %3233 = vmatpush.msrb.mxu3 %v4407_v30  ;;  %3147 = vmatpush.msrb.mxu0 %v4399_v26 }
 0x13b   : > { %v1303_v63 = vadd.f32 %v1302_v57, %v1277_v60  ;;  %2969 = vmatmul.f32.vlgmr.msrb.gmra.mxu1 %v4239_v13 }
 0x13c   : > { %3178 = vmatpush.msrb.mxu1 %v3177_v59  ;;  %3149 = vmatpush.msrb.mxu0 %v4407_v30 }
 0x13d   : > { %v1328_v1 = vadd.f32 %v1327_v61, %v1303_v63  ;;  %3105 = vmatmul.f32.vlgmr.msra.gmra.mxu2 %v4239_v13 }
 0x13e   : > { %3128 = vmatmul.f32.vlgmr.msra.gmra.mxu3 %v4239_v13  ;;  %v1354_v3 = vpop.f32.mrf.mxu0  ;;  %3184 = vmatpush.msrb.mxu1 %v3183_v62 }
 0x13f   : > { %3306 = vmatpush.msra.mxu2 %v4413_v33  ;;  %v1355_v4 = vadd.f32 %v1354_v3, %v1328_v1  ;;  %3337 = vmatpush.msra.mxu3 %v3336_v0 }
 0x140   : > { %v1377_v5 = vpop.f32.mrf.mxu1  ;;  %v1404_v6 = vpop.f32.mrf.mxu2 }
 0x141   : > { %3308 = vmatpush.msra.mxu2 %v4421_v34  ;;  %v4467_v7 = vadd.f32 %v1377_v5, %v1355_v4  ;;  %3053 = vmatmul.f32.vlgmr.msra.gmra.mxu0 %v4247_v53  ;;  %v1435_v8 = vpop.f32.mrf.mxu3 }
 0x142   : > { %3343 = vmatpush.msra.mxu3 %v3342_v2  ;;  %v1436_v9 = vadd.f32 %v1435_v8, %v1404_v6  ;;  %3258 = vmatpush.msra.mxu0 %v3175_v42 }
 0x143   : > { %3078 = vmatmul.f32.vlgmr.msra.gmra.mxu1 %v4257_v21 }
 0x144   : > { %3283 = vmatpush.msra.mxu1 %v4399_v26  ;;  %3262 = vmatpush.msra.mxu0 %v3181_v46 }
 0x145   : > { %3212 = vmatmul.f32.vlgmr.msrb.gmra.mxu2 %v4247_v53 }
 0x146   : > { %3237 = vmatmul.f32.vlgmr.msrb.gmra.mxu3 %v4257_v21  ;;  %v1461_v10 = vpop.f32.mrf.mxu0  ;;  %3285 = vmatpush.msra.mxu1 %v4407_v30 }
 0x147   : > { %3417 = vmatpush.msrb.mxu2 %v3334_v48  ;;  %v1462_v11 = vadd.f32 %v1461_v10, %v1436_v9  ;;  %3442 = vmatpush.msrb.mxu3 %v4413_v33 }
 0x148   : > { %v1486_v12 = vpop.f32.mrf.mxu1  ;;  %v1513_v14 = vpop.f32.mrf.mxu2 }
 0x149   : > { %3421 = vmatpush.msrb.mxu2 %v3340_v51  ;;  %v1487_v15 = vadd.f32 %v1486_v12, %v1462_v11  ;;  %3155 = vmatmul.f32.vlgmr.msrb.gmra.mxu0 %v4287_v31  ;;  %v1536_v16 = vpop.f32.mrf.mxu3 }
 0x14a   : > { %3444 = vmatpush.msrb.mxu3 %v4421_v34  ;;  %3365 = vmatpush.msrb.mxu0 %v4429_v39 }
 0x14b   : > { %v1514_v17 = vadd.f32 %v1513_v14, %v1487_v15  ;;  %3186 = vmatmul.f32.vlgmr.msrb.gmra.mxu1 %v4239_v13 }
 0x14c   : > { %3390 = vmatpush.msrb.mxu1 %v4413_v33  ;;  %3368 = vmatpush.msrb.mxu0 %v4437_v45 }
 0x14d   : > { %v4482_v18 = vadd.f32 %v1536_v16, %v1514_v17  ;;  %3314 = vmatmul.f32.vlgmr.msra.gmra.mxu2 %v4287_v31  ;;  %v4506_v17 = vld [vmem:[%s4548_s6] sm:$0xff] }
 0x14e   : > { %3345 = vmatmul.f32.vlgmr.msra.gmra.mxu3 %v4239_v13  ;;  %v1563_v19 = vpop.f32.mrf.mxu0  ;;  %3392 = vmatpush.msrb.mxu1 %v4421_v34 }
 0x150   : > { %v1594_v20 = vpop.f32.mrf.mxu1  ;;  %v1620_v22 = vpop.f32.mrf.mxu2 }
 0x151   : > { %v1595_v23 = vadd.f32 %v1594_v20, %v1563_v19  ;;  %3264 = vmatmul.f32.vlgmr.msra.gmra.mxu0 %v4239_v13  ;;  %v1645_v24 = vpop.f32.mrf.mxu3  ;;  %v3452_v20 = vperm.slane %v4506_v17, 0 }
 0x153   : > { %v1621_v26 = vadd.f32 %v1620_v22, %v1595_v23  ;;  %3287 = vmatmul.f32.vlgmr.msra.gmra.mxu1 %v4239_v13 }
 0x155   : > { %v1646_v25 = vadd.f32 %v1645_v24, %v1621_v26  ;;  %3423 = vmatmul.f32.vlgmr.msrb.gmra.mxu2 %v4239_v13 }
 0x156   : > { %3446 = vmatmul.f32.vlgmr.msrb.gmra.mxu3 %v4239_v13  ;;  %v1672_v31 = vpop.f32.mrf.mxu0 }
 0x157   : > { %v1673_v28 = vadd.f32 %v1672_v31, %v1646_v25 }
 0x158   : > { %v1695_v29 = vpop.f32.mrf.mxu1  ;;  %v1722_v30 = vpop.f32.mrf.mxu2 }
 0x159   : > { %v4491_v32 = vadd.f32 %v1695_v29, %v1673_v28  ;;  %3371 = vmatmul.f32.vlgmr.msrb.gmra.mxu0 %v4247_v53  ;;  %v1753_v33 = vpop.f32.mrf.mxu3  ;;  %v3453_v29 = vperm.slane %v4506_v17, 1 }
 0x15a   : > { %v1754_v38 = vadd.f32 %v1753_v33, %v1722_v30 }
 0x15b   : > { %3396 = vmatmul.f32.vlgmr.msrb.gmra.mxu1 %v4257_v21 }
 0x15e   : > { %v1779_v34 = vpop.f32.mrf.mxu0 }
 0x15f   : > { %v1780_v35 = vadd.f32 %v1779_v34, %v1754_v38 }
 0x160   : > { %v1804_v36 = vpop.f32.mrf.mxu1  ;;  %v1831_v37 = vpop.f32.mrf.mxu2 }
 0x161   : > { %v1805_v39 = vadd.f32 %v1804_v36, %v1780_v35  ;;  %v1854_v40 = vpop.f32.mrf.mxu3 }
 0x163   : > { %v1832_v41 = vadd.f32 %v1831_v37, %v1805_v39 }
 0x165   : > { %v4495_v13 = vadd.f32 %v1854_v40, %v1832_v41 }
 0x166   : > { %v1881_v42 = vpop.f32.mrf.mxu0 }
 0x168   : > { %v1912_v43 = vpop.f32.mrf.mxu1  ;;  %v1938_v44 = vpop.f32.mrf.mxu2 }
 0x169   : > { %v1913_v45 = vadd.f32 %v1912_v43, %v1881_v42  ;;  %v1963_v46 = vpop.f32.mrf.mxu3 }
 0x16b   : > { %v1939_v47 = vadd.f32 %v1938_v44, %v1913_v45 }
 0x16d   : > { %v1964_v53 = vadd.f32 %v1963_v46, %v1939_v47 }
 0x16e   : > { %v1990_v48 = vpop.f32.mrf.mxu0 }
 0x16f   : > { %v1991_v49 = vadd.f32 %v1990_v48, %v1964_v53 }
 0x170   : > { %v2013_v51 = vpop.f32.mrf.mxu1  ;;  %v2040_v21 = vpop.f32.mrf.mxu2 }
 0x171   : > { %v4497_v52 = vadd.f32 %v2013_v51, %v1991_v49  ;;  %v2071_v54 = vpop.f32.mrf.mxu3  ;;  %v3454_v51 = vperm.slane %v4506_v17, 2 }
 0x172   : > { %v2072_v55 = vadd.f32 %v2071_v54, %v2040_v21 }
 0x176   : > { %v2097_v56 = vpop.f32.mrf.mxu0 }
 0x177   : > { %v2098_v57 = vadd.f32 %v2097_v56, %v2072_v55 }
 0x178   : > { %v2122_v59 = vpop.f32.mrf.mxu1  ;;  %v2149_v60 = vpop.f32.mrf.mxu2 }
 0x179   : > { %v2123_v61 = vadd.f32 %v2122_v59, %v2098_v57  ;;  %v2172_v58 = vpop.f32.mrf.mxu3 }
 0x17b   : > { %v2150_v62 = vadd.f32 %v2149_v60, %v2123_v61 }
 0x17d   : > { %v4499_v63 = vadd.f32 %v2172_v58, %v2150_v62 }
 0x17e   : > { %v2202_v0 = vpop.f32.mrf.mxu0 }
 0x17f   : > { %v2203_v1 = vadd.f32 %v2202_v0, %v4404_v27 }
 0x180   : > { %v2233_v2 = vpop.f32.mrf.mxu1  ;;  %v2259_v3 = vpop.f32.mrf.mxu2 }
 0x181   : > { %v2234_v4 = vadd.f32 %v2233_v2, %v2203_v1  ;;  %v2284_v5 = vpop.f32.mrf.mxu3 }
 0x183   : > { %v2260_v6 = vadd.f32 %v2259_v3, %v2234_v4 }
 0x185   : > { %v2285_v8 = vadd.f32 %v2284_v5, %v2260_v6 }
 0x186   : > { %v2311_v9 = vpop.f32.mrf.mxu0 }
 0x187   : > { %v2312_v10 = vadd.f32 %v2311_v9, %v2285_v8  ;;  %v3455_v8 = vperm.slane %v4506_v17, 3 }
 0x188   : > { %v2334_v11 = vpop.f32.mrf.mxu1  ;;  %v2361_v12 = vpop.f32.mrf.mxu2 }
 0x189   : > { %v2335_v14 = vadd.f32 %v2334_v11, %v2312_v10  ;;  %v2362_v15 = vadd.f32 %v2361_v12, %v4446_v50  ;;  %v2392_v16 = vpop.f32.mrf.mxu3  ;;  %v4512_v50 = vld [vmem:[%s4549_s7] sm:$0xff] }
 0x18a   : > { %v3486_v33 = vperm.slane %v4512_v50, 0  ;;  %v3487_v36 = vperm.slane %v4512_v50, 1  ;;  %v3488_v59 = vperm.slane %v4512_v50, 2  ;;  %v3489_v11 = vperm.slane %v4512_v50, 3 }
 0x18b   : > { %v2393_v27 = vadd.f32 %v2392_v16, %v2362_v15  ;;  %v3468_v31 = vadd.f32 %v3452_v20, %v2335_v14 }
 0x18d   : > { %v3476_v34 = vmax.f32 %v3468_v31, 0.0  ;;  %v3456_v31 = vperm.slane %v4506_v17, 4 }
 0x18e   : > { %v2418_v19 = vpop.f32.mrf.mxu0 }
 0x18f   : > { %v2419_v22 = vadd.f32 %v2418_v19, %v2393_v27  ;;  %v3502_v44 = vmul.f32 %v3486_v33, %v3476_v34  ;;  %v3490_v34 = vperm.slane %v4512_v50, 4 }
 0x190   : > { %v2443_v23 = vpop.f32.mrf.mxu1  ;;  %v2470_v24 = vpop.f32.mrf.mxu2 }
 0x191   : > { %v2444_v26 = vadd.f32 %v2443_v23, %v2419_v22  ;;  %v2493_v25 = vpop.f32.mrf.mxu3 }
 0x193   : > { %v2471_v28 = vadd.f32 %v2470_v24, %v2444_v26 }
 0x195   : > { %v2494_v30 = vadd.f32 %v2493_v25, %v2471_v28 }
 0x196   : > { %v2520_v38 = vpop.f32.mrf.mxu0 }
 0x197   : > { %v3469_v35 = vadd.f32 %v3453_v29, %v2494_v30  ;;  %v2521_v37 = vadd.f32 %v2520_v38, %v4467_v7 }
 0x198   : > { %v2551_v39 = vpop.f32.mrf.mxu1  ;;  %v2577_v40 = vpop.f32.mrf.mxu2 }
 0x199   : > { %v3477_v41 = vmax.f32 %v3469_v35, 0.0  ;;  %v2552_v42 = vadd.f32 %v2551_v39, %v2521_v37  ;;  %v2602_v43 = vpop.f32.mrf.mxu3 }
 0x19b   : > { %v3503_v45 = vmul.f32 %v3487_v36, %v3477_v41  ;;  %v2578_v46 = vadd.f32 %v2577_v40, %v2552_v42 }
 0x19d   : > { %v3510_v47 = vadd.f32 %v3503_v45, %v3502_v44  ;;  %v2603_v53 = vadd.f32 %v2602_v43, %v2578_v46 }
 0x19e   : > { %v2629_v48 = vpop.f32.mrf.mxu0 }
 0x19f   : > { %v2630_v49 = vadd.f32 %v2629_v48, %v2603_v53 }
 0x1a0   : > { %v2652_v21 = vpop.f32.mrf.mxu1  ;;  %v2679_v54 = vpop.f32.mrf.mxu2 }
 0x1a1   : > { %v2653_v55 = vadd.f32 %v2652_v21, %v2630_v49  ;;  %v2680_v56 = vadd.f32 %v2679_v54, %v4482_v18  ;;  %v2710_v7 = vpop.f32.mrf.mxu3  ;;  %v3491_v49 = vperm.slane %v4512_v50, 5 }
 0x1a3   : > { %v3470_v57 = vadd.f32 %v3454_v51, %v2653_v55  ;;  %v2711_v61 = vadd.f32 %v2710_v7, %v2680_v56 }
 0x1a5   : > { %v3478_v60 = vmax.f32 %v3470_v57, 0.0 }
 0x1a6   : > { %v2736_v58 = vpop.f32.mrf.mxu0 }
 0x1a7   : > { %v3504_v62 = vmul.f32 %v3488_v59, %v3478_v60  ;;  %v2737_v0 = vadd.f32 %v2736_v58, %v2711_v61 }
 0x1a8   : > { %v2761_v1 = vpop.f32.mrf.mxu1  ;;  %v2788_v2 = vpop.f32.mrf.mxu2 }
 0x1a9   : > { %v3511_v3 = vadd.f32 %v3510_v47, %v3504_v62  ;;  %v2762_v4 = vadd.f32 %v2761_v1, %v2737_v0  ;;  %v2811_v5 = vpop.f32.mrf.mxu3  ;;  %v3457_v47 = vperm.slane %v4506_v17, 5  ;;  %v3458_v0 = vperm.slane %v4506_v17, 6 }
 0x1ab   : > { %v2789_v6 = vadd.f32 %v2788_v2, %v2762_v4 }
 0x1ad   : > { %v2812_v9 = vadd.f32 %v2811_v5, %v2789_v6  ;;  %v3492_v6 = vperm.slane %v4512_v50, 6 }
 0x1ae   : > { %v2838_v10 = vpop.f32.mrf.mxu0 }
 0x1af   : > { %v3471_v18 = vadd.f32 %v3455_v8, %v2812_v9  ;;  %v2839_v12 = vadd.f32 %v2838_v10, %v4491_v32 }
 0x1b0   : > { %v2869_v14 = vpop.f32.mrf.mxu1  ;;  %v2895_v15 = vpop.f32.mrf.mxu2 }
 0x1b1   : > { %v3479_v16 = vmax.f32 %v3471_v18, 0.0  ;;  %v2870_v27 = vadd.f32 %v2869_v14, %v2839_v12  ;;  %v2920_v19 = vpop.f32.mrf.mxu3 }
 0x1b3   : > { %v3505_v20 = vmul.f32 %v3489_v11, %v3479_v16  ;;  %v2896_v22 = vadd.f32 %v2895_v15, %v2870_v27 }
 0x1b5   : > { %v3512_v23 = vadd.f32 %v3511_v3, %v3505_v20  ;;  %v2921_v24 = vadd.f32 %v2920_v19, %v2896_v22  ;;  %v3459_v20 = vperm.slane %v4506_v17, 7 }
 0x1b6   : > { %v2947_v26 = vpop.f32.mrf.mxu0 }
 0x1b7   : > { %v2948_v25 = vadd.f32 %v2947_v26, %v2921_v24 }
 0x1b8   : > { %v2970_v28 = vpop.f32.mrf.mxu1  ;;  %v2997_v29 = vpop.f32.mrf.mxu2 }
 0x1b9   : > { %v2971_v30 = vadd.f32 %v2970_v28, %v2948_v25  ;;  %v2998_v33 = vadd.f32 %v2997_v29, %v4495_v13  ;;  %v3028_v38 = vpop.f32.mrf.mxu3  ;;  %v3520_v28 = vstv %s3519_s16 }
 0x1bb   : > { %v3472_v32 = vadd.f32 %v3456_v31, %v2971_v30  ;;  %v3029_v36 = vadd.f32 %v3028_v38, %v2998_v33  ;;  %v3523_v31 = vlaneseq }
 0x1bd   : > { %v3480_v35 = vmax.f32 %v3472_v32, 0.0  ;;  %v3524_v29 = vand.u32 127, %v3523_v31 }
 0x1be   : > { %v3054_v37 = vpop.f32.mrf.mxu0 }
 0x1bf   : > { %v3506_v39 = vmul.f32 %v3490_v34, %v3480_v35  ;;  %v3055_v40 = vadd.f32 %v3054_v37, %v3029_v36 }
 0x1c0   : > { %v3079_v41 = vpop.f32.mrf.mxu1  ;;  %v3106_v42 = vpop.f32.mrf.mxu2 }
 0x1c1   : > { %v3080_v43 = vadd.f32 %v3079_v41, %v3055_v40  ;;  %v3129_v44 = vpop.f32.mrf.mxu3  ;;  %v3513_v45 = vadd.f32 %v3512_v23, %v3506_v39  ;;  %v3493_v23 = vperm.slane %v4512_v50, 7 }
 0x1c3   : > { %v3107_v46 = vadd.f32 %v3106_v42, %v3080_v43 }
 0x1c5   : > { %v3130_v53 = vadd.f32 %v3129_v44, %v3107_v46 }
 0x1c6   : > { %v3156_v48 = vpop.f32.mrf.mxu0 }
 0x1c7   : > { %v3473_v13 = vadd.f32 %v3457_v47, %v3130_v53  ;;  %v3157_v51 = vadd.f32 %v3156_v48, %v4497_v52 }
 0x1c8   : > { %v3187_v21 = vpop.f32.mrf.mxu1  ;;  %v3213_v54 = vpop.f32.mrf.mxu2 }
 0x1c9   : > { %v3481_v55 = vmax.f32 %v3473_v13, 0.0  ;;  %v3188_v56 = vadd.f32 %v3187_v21, %v3157_v51  ;;  %v3238_v7 = vpop.f32.mrf.mxu3 }
 0x1cb   : > { %v3507_v57 = vmul.f32 %v3491_v49, %v3481_v55  ;;  %v3214_v59 = vadd.f32 %v3213_v54, %v3188_v56 }
 0x1cd   : > { %v3239_v60 = vadd.f32 %v3238_v7, %v3214_v59  ;;  %v3514_v61 = vadd.f32 %v3513_v45, %v3507_v57 }
 0x1ce   : > { %v3265_v58 = vpop.f32.mrf.mxu0 }
 0x1cf   : > { %v3266_v62 = vadd.f32 %v3265_v58, %v3239_v60 }
 0x1d0   : > { %v3288_v1 = vpop.f32.mrf.mxu1  ;;  %v3315_v2 = vpop.f32.mrf.mxu2 }
 0x1d1   : > { %v3289_v3 = vadd.f32 %v3288_v1, %v3266_v62  ;;  %v3316_v4 = vadd.f32 %v3315_v2, %v4499_v63  ;;  %v3346_v5 = vpop.f32.mrf.mxu3 }
 0x1d3   : > { %v3474_v52 = vadd.f32 %v3458_v0, %v3289_v3  ;;  %v3347_v9 = vadd.f32 %v3346_v5, %v3316_v4 }
 0x1d5   : > { %v3482_v8 = vmax.f32 %v3474_v52, 0.0 }
 0x1d6   : > { %v3372_v10 = vpop.f32.mrf.mxu0 }
 0x1d7   : > { %v3373_v18 = vadd.f32 %v3372_v10, %v3347_v9  ;;  %v3508_v11 = vmul.f32 %v3492_v6, %v3482_v8 }
 0x1d8   : > { %v3397_v12 = vpop.f32.mrf.mxu1  ;;  %v3424_v14 = vpop.f32.mrf.mxu2 }
 0x1d9   : > { %v3398_v15 = vadd.f32 %v3397_v12, %v3373_v18  ;;  %v3515_v16 = vadd.f32 %v3514_v61, %v3508_v11  ;;  %v3447_v27 = vpop.f32.mrf.mxu3 }
 0x1db   : > { %v3425_v19 = vadd.f32 %v3424_v14, %v3398_v15 }
 0x1dd   : > { %v3448_v22 = vadd.f32 %v3447_v27, %v3425_v19 }
 0x1df   : > { %v3475_v63 = vadd.f32 %v3459_v20, %v3448_v22 }
 0x1e1   : > { %v3483_v24 = vmax.f32 %v3475_v63, 0.0 }
 0x1e3   : > { %v3509_v26 = vmul.f32 %v3493_v23, %v3483_v24 }
 0x1e5   : > { %v3516_v25 = vadd.f32 %v3515_v16, %v3509_v26 }
 0x1e7   : > { %3517 = vadd.xlane.f32.xlu0 %v3516_v25 }
 0x25a   : > { %v3518_v30 = vpop.xlane.xlu0 %3517 }
 0x25b   : > { %v3521_v33 = vadd.f32 %v3520_v28, %v3518_v30 }
 0x25d   : > { %v3525_v38 = vperm.slane %v3521_v33, %v3524_v29 }
 0x25f   : > { %3528 = vst.msk [vmem:[%s218_s23] sm:$0x1] %vm3527_vm1, %v3525_v38 }
 0x260 PF: > { %s33_s19 = sadd.s32 1, %s3852_s19  }
 0x261   : > { %p30_p4 = scmp.ge.s32.totalorder %s33_s19, 6  }
 0x263   :  { %32 = sbr.rel (!%p30_p4) target bundleno = 9 (0x9), region = 671 }
 0x268   :  { %3546 = vsyncmov [#allocation4] }
 0x26b   :  { %s3547_s8 = vpop.sfrf %3546 }
 0x26c   :  { %p3762_p5 = scmp.ne.s32.totalorder %s3547_s8, 0 }
 0x26e   :  { %3551 = shalt.err (%p3762_p5)  }
 0x26f   :  { %3553 = vsyncmov [#allocation4 + $0x1] }
 0x272   :  { %s3554_s20 = vpop.sfrf %3553 }
 0x273   :  { %p3763_p6 = scmp.ne.s32.totalorder %s3554_s20, 0 }
 0x275   :  { %3558 = shalt.err (%p3763_p6)  }
 0x276   :  { %3560 = vsyncmov [#allocation4 + $0x2] }
 0x279   :  { %s3561_s21 = vpop.sfrf %3560 }
 0x27a   :  { %p3764_p7 = scmp.ne.s32.totalorder %s3561_s21, 0 }
 0x27c   :  { %3565 = shalt.err (%p3764_p7)  }
 0x27d   :  { %3567 = vsyncmov [#allocation4 + $0x3] }
 0x280   :  { %s3568_s0 = vpop.sfrf %3567 }
 0x281   :  { %p3765_p8 = scmp.ne.s32.totalorder %s3568_s0, 0 }
 0x283   :  { %3572 = shalt.err (%p3765_p8)  }
 0x284   :  { %3574 = vsyncmov [#allocation4 + $0x4] }
 0x287   :  { %s3575_s23 = vpop.sfrf %3574 }
 0x288   :  { %p3766_p9 = scmp.ne.s32.totalorder %s3575_s23, 0 }
 0x28a   :  { %3579 = shalt.err (%p3766_p9)  }
 0x28b   :  { %3581 = vsyncmov [#allocation4 + $0x5] }
 0x28e   :  { %s3582_s2 = vpop.sfrf %3581 }
 0x28f   :  { %p3767_p10 = scmp.ne.s32.totalorder %s3582_s2, 0 }
 0x291   :  { %3586 = shalt.err (%p3767_p10)  }
 0x292   :  { %3588 = vsyncmov [#allocation4 + $0x6] }
 0x295   :  { %s3589_s3 = vpop.sfrf %3588 }
 0x296   :  { %p3768_p11 = scmp.ne.s32.totalorder %s3589_s3, 0 }
 0x298   :  { %3593 = shalt.err (%p3768_p11)  }
 0x299   :  { %3595 = vsyncmov [#allocation4 + $0x7] }
 0x29c   :  { %s3596_s4 = vpop.sfrf %3595 }
 0x29d   :  { %p3769_p12 = scmp.ne.s32.totalorder %s3596_s4, 0 }
 0x29f   :  { %3600 = shalt.err (%p3769_p12)  }
 0x2a0   :  { %3602 = vsyncmov [#allocation4 + $0x8] }
 0x2a3   :  { %s3603_s5 = vpop.sfrf %3602 }
 0x2a4   :  { %p3770_p13 = scmp.ne.s32.totalorder %s3603_s5, 0 }
 0x2a6   :  { %3607 = shalt.err (%p3770_p13)  }
 0x2a7   :  { %3609 = vsyncmov [#allocation4 + $0x9] }
 0x2aa   :  { %s3610_s6 = vpop.sfrf %3609 }
 0x2ab   :  { %p3771_p0 = scmp.ne.s32.totalorder %s3610_s6, 0 }
 0x2ad   :  { %3614 = shalt.err (%p3771_p0)  }
 0x2ae   :  { %3616 = vsyncmov [#allocation4 + $0xa] }
 0x2b1   :  { %s3617_s7 = vpop.sfrf %3616 }
 0x2b2   :  { %p3772_p1 = scmp.ne.s32.totalorder %s3617_s7, 0 }
 0x2b4   :  { %3621 = shalt.err (%p3772_p1)  }
 0x2b5   :  { %3623 = vsyncmov [#allocation4 + $0xb] }
 0x2b8   :  { %s3624_s9 = vpop.sfrf %3623 }
 0x2b9   :  { %p3773_p2 = scmp.ne.s32.totalorder %s3624_s9, 0 }
 0x2bb   :  { %3628 = shalt.err (%p3773_p2)  }
 0x2bc   :  { %3630 = vsyncmov [#allocation4 + $0xc] }
 0x2bf   :  { %s3631_s19 = vpop.sfrf %3630 }
 0x2c0   :  { %p3774_p3 = scmp.ne.s32.totalorder %s3631_s19, 0 }
 0x2c2   :  { %3635 = shalt.err (%p3774_p3)  }
 0x2c3   :  { %3637 = vsyncmov [#allocation4 + $0xd] }
 0x2c6   :  { %s3638_s22 = vpop.sfrf %3637 }
 0x2c7   :  { %p3775_p4 = scmp.ne.s32.totalorder %s3638_s22, 0 }
 0x2c9   :  { %3642 = shalt.err (%p3775_p4)  }
 0x2ca   :  { %3644 = vsyncmov [#allocation4 + $0xe] }
 0x2cd   :  { %s3645_s24 = vpop.sfrf %3644 }
 0x2ce   :  { %p3776_p5 = scmp.ne.s32.totalorder %s3645_s24, 0 }
 0x2d0   :  { %3649 = shalt.err (%p3776_p5)  }
 0x2d1   :  { %3651 = vsyncmov [#allocation4 + $0xf] }
 0x2d4   :  { %s3652_s25 = vpop.sfrf %3651 }
 0x2d5   :  { %p3777_p6 = scmp.ne.s32.totalorder %s3652_s25, 0 }
 0x2d7   :  { %3656 = shalt.err (%p3777_p6)  }

</bundles_post_ra>
